<compile_context>
chip_gen: v5e
topology: v5e:2x2
jax: 0.10.0
libtpu: 0.0.40
codegen_flags: <defaults>
</compile_context>

<pallas_src>
import jax
import jax.numpy as jnp
import numpy as np
from jax import lax
from jax.experimental import pallas as pl
from jax.experimental.pallas import tpu as pltpu

EPS = 1e-5     # nn.BatchNorm2d default eps
LANE = 128     # TPU lane width


# ---------------------------------------------------------------------------
# small helpers
# ---------------------------------------------------------------------------
def _round_up(n, m):
    return (n + m - 1) // m * m


def _bytes(shape, dtype):
    return int(np.prod(shape)) * jnp.dtype(dtype).itemsize


def _mosaic_params(dims, vmem_est_bytes):
    # Explicit VMEM budgeting (v5e default scoped 16 MiB, v7x physical 64 MiB).
    limit = int(min(100 * 2**20, max(16 * 2**20, 4 * vmem_est_bytes)))
    return pltpu.CompilerParams(dimension_semantics=dims, vmem_limit_bytes=limit)


# ---------------------------------------------------------------------------
# Stage 1: conv7x7(stride) + fused 1x1 skip, M-tiled, BN partial-stat accumulate
# ---------------------------------------------------------------------------
def _make_stage1_kernel(tm, Cp, m_real):
    def kernel(col_ref, w_ref, y1_ref, s_ref, st_ref):
        # (tm, K1p) @ (K1p, 2*Cp): cols [0,Cp) = conv7x7, cols [Cp,2Cp) = centre-tap 1x1 skip
        acc = jnp.dot(col_ref[...], w_ref[...], preferred_element_type=jnp.float32)
        y1 = acc[:, :Cp].astype(jnp.bfloat16)      # bf16 writeback: feeds the next MXU stage
        sk = acc[:, Cp:].astype(jnp.bfloat16)
        y1_ref[...] = y1
        s_ref[...] = sk

        # Per-tile BN partials (sum + centred M2, Chan/Welford mergeable), computed from the
        # bf16-quantised values so the finalize pass sees exactly the data the stats describe.
        i = pl.program_id(0)
        valid = jnp.minimum(tm, m_real - i * tm).astype(jnp.float32)   # real rows in this tile
        padn = tm - valid                                              # zero-padded rows

        def tile_stats(v):
            vf = v.astype(jnp.float32)
            ssum = jnp.sum(vf, axis=0, keepdims=True)                  # (1, Cp)
            mu = ssum / valid
            # zero pad-rows each add mu^2 to the centred sum -> subtract them back out
            m2 = jnp.sum((vf - mu) ** 2, axis=0, keepdims=True) - padn * mu * mu
            return ssum, m2

        s1, m1 = tile_stats(y1)
        s3, m3 = tile_stats(sk)
        st_ref[0] = jnp.concatenate([s1, m1, s3, m3], axis=0)          # (4, Cp)
    return kernel


def _stage1(col, w13, *, tm, nt, Mp, K1p, Cp, m_real):
    flops = 2 * Mp * K1p * (2 * Cp)
    bytes_accessed = (_bytes((Mp, K1p), jnp.bfloat16) + _bytes((K1p, 2 * Cp), jnp.bfloat16)
                      + 2 * _bytes((Mp, Cp), jnp.bfloat16) + _bytes((nt, 4, Cp), jnp.float32))
    vmem_est = (2 * _bytes((tm, K1p), jnp.bfloat16)           # streamed patch tile x2 buffers
                + _bytes((K1p, 2 * Cp), jnp.bfloat16)         # resident weights
                + 4 * _bytes((tm, Cp), jnp.bfloat16)          # y1 / skip tiles x2 buffers
                + _bytes((tm, 2 * Cp), jnp.float32))          # f32 accumulator value
    return pl.pallas_call(
        _make_stage1_kernel(tm, Cp, m_real),
        grid=(nt,),
        in_specs=[
            pl.BlockSpec((tm, K1p), lambda i: (i, 0)),        # streamed patches
            pl.BlockSpec((K1p, 2 * Cp), lambda i: (0, 0)),    # weights: constant -> resident
        ],
        out_specs=(
            pl.BlockSpec((tm, Cp), lambda i: (i, 0)),
            pl.BlockSpec((tm, Cp), lambda i: (i, 0)),
            pl.BlockSpec((1, 4, Cp), lambda i: (i, 0, 0)),
        ),
        out_shape=(
            jax.ShapeDtypeStruct((Mp, Cp), jnp.bfloat16),     # y1  (pre-BN conv7x7)
            jax.ShapeDtypeStruct((Mp, Cp), jnp.bfloat16),     # s   (pre-BN 1x1 skip)
            jax.ShapeDtypeStruct((nt, 4, Cp), jnp.float32),   # per-tile BN partials
        ),
        compiler_params=_mosaic_params(("parallel",), vmem_est),
        cost_estimate=pl.CostEstimate(flops=flops, transcendentals=0,
                                      bytes_accessed=bytes_accessed),
    )(col, w13)


# ---------------------------------------------------------------------------
# BN1 finalize: y1 -> relu(y1*scale + shift), bf16 writeback
# ---------------------------------------------------------------------------
def _bn_relu_kernel(y_ref, sc_ref, sh_ref, o_ref):
    y = y_ref[...].astype(jnp.float32)
    o_ref[...] = jnp.maximum(y * sc_ref[...] + sh_ref[...], 0.0).astype(jnp.bfloat16)


def _bn_relu(y, scale, shift, *, tm, nt, Mp, Cp):
    vmem_est = 4 * _bytes((tm, Cp), jnp.bfloat16) + 2 * _bytes((1, Cp), jnp.float32)
    bytes_accessed = 2 * _bytes((Mp, Cp), jnp.bfloat16) + 2 * _bytes((1, Cp), jnp.float32)
    return pl.pallas_call(
        _bn_relu_kernel,
        grid=(nt,),
        in_specs=[pl.BlockSpec((tm, Cp), lambda i: (i, 0)),
                  pl.BlockSpec((1, Cp), lambda i: (0, 0)),
                  pl.BlockSpec((1, Cp), lambda i: (0, 0))],
        out_specs=pl.BlockSpec((tm, Cp), lambda i: (i, 0)),
        out_shape=jax.ShapeDtypeStruct((Mp, Cp), jnp.bfloat16),
        compiler_params=_mosaic_params(("parallel",), vmem_est),
        cost_estimate=pl.CostEstimate(flops=3 * Mp * Cp, transcendentals=0,
                                      bytes_accessed=bytes_accessed),
    )(y, scale, shift)


# ---------------------------------------------------------------------------
# Stage 2: conv3x3(pad=1) with in-kernel patch construction + BN2 accumulate
# ---------------------------------------------------------------------------
def _make_stage2_kernel(Ho, Wo, Hp2, Cp):
    HW = Ho * Wo
    inv_hw = 1.0 / HW

    def kernel(h_ref, w_ref, y2_ref, st_ref):
        h = h_ref[0]                                           # (Hp2, Wp2, Cp) bf16, one image
        acc = jnp.zeros((HW, Cp), jnp.float32)
        for dj in range(3):                                    # width tap: one unit-stride slice
            hj = h[:, dj:dj + Wo, :].reshape(Hp2 * Wo, Cp)
            for di in range(3):                                # height tap: aligned row window
                a = hj[di * Wo: di * Wo + HW, :]
                acc = acc + jnp.dot(a, w_ref[di * 3 + dj],
                                    preferred_element_type=jnp.float32)
        y2 = acc.astype(jnp.bfloat16)
        y2_ref[...] = y2
        # per-image BN partials from the bf16-quantised conv output
        yf = y2.astype(jnp.float32)
        ssum = jnp.sum(yf, axis=0, keepdims=True)
        mu = ssum * inv_hw
        m2 = jnp.sum((yf - mu) ** 2, axis=0, keepdims=True)
        st_ref[0] = jnp.concatenate([ssum, m2], axis=0)        # (2, Cp)
    return kernel


def _stage2(h1_pad, w2, *, n, Ho, Wo, Cp):
    Hp2, Wp2 = Ho + 2, Wo + 2
    HW = Ho * Wo
    flops = 2 * n * HW * 9 * Cp * Cp
    bytes_accessed = (_bytes((n, Hp2, Wp2, Cp), jnp.bfloat16) + _bytes((9, Cp, Cp), jnp.bfloat16)
                      + _bytes((n * HW, Cp), jnp.bfloat16) + _bytes((n, 2, Cp), jnp.float32))
    vmem_est = (2 * _bytes((Hp2, Wp2, Cp), jnp.bfloat16)
                + _bytes((9, Cp, Cp), jnp.bfloat16)
                + 2 * _bytes((HW, Cp), jnp.bfloat16)
                + 4 * _bytes((HW, Cp), jnp.float32))
    return pl.pallas_call(
        _make_stage2_kernel(Ho, Wo, Hp2, Cp),
        grid=(n,),
        in_specs=[pl.BlockSpec((1, Hp2, Wp2, Cp), lambda b: (b, 0, 0, 0)),  # halo'd image
                  pl.BlockSpec((9, Cp, Cp), lambda b: (0, 0, 0))],          # resident weights
        out_specs=(pl.BlockSpec((HW, Cp), lambda b: (b, 0)),
                   pl.BlockSpec((1, 2, Cp), lambda b: (b, 0, 0))),
        out_shape=(jax.ShapeDtypeStruct((n * HW, Cp), jnp.bfloat16),        # y2 (pre-BN)
                   jax.ShapeDtypeStruct((n, 2, Cp), jnp.float32)),          # per-image partials
        compiler_params=_mosaic_params(("parallel",), vmem_est),
        cost_estimate=pl.CostEstimate(flops=flops, transcendentals=0,
                                      bytes_accessed=bytes_accessed),
    )(h1_pad, w2)
    # TODO(synk): at non-toy H*W, add an output-row-band grid axis (manual halo DMA) so a
    # single image block is not the VMEM granule.


# ---------------------------------------------------------------------------
# Tail finalize: relu(BN2(y2)) + BN3(skip)
# ---------------------------------------------------------------------------
def _tail_kernel(y2_ref, s_ref, sc2_ref, sh2_ref, sc3_ref, sh3_ref, o_ref):
    # Skip branch first, then accumulate the residual branch into it (smaller live set).
    out = s_ref[...].astype(jnp.float32) * sc3_ref[...] + sh3_ref[...]
    out = out + jnp.maximum(
        y2_ref[...].astype(jnp.float32) * sc2_ref[...] + sh2_ref[...], 0.0)
    o_ref[...] = out


def _tail(y2, s, sc2, sh2, sc3, sh3, *, tm, nt, Mp, Cp):
    vmem_est = (4 * _bytes((tm, Cp), jnp.bfloat16) + 2 * _bytes((tm, Cp), jnp.float32)
                + 4 * _bytes((1, Cp), jnp.float32))
    bytes_accessed = (2 * _bytes((Mp, Cp), jnp.bfloat16) + _bytes((Mp, Cp), jnp.float32)
                      + 4 * _bytes((1, Cp), jnp.float32))
    vec = pl.BlockSpec((1, Cp), lambda i: (0, 0))
    return pl.pallas_call(
        _tail_kernel,
        grid=(nt,),
        in_specs=[pl.BlockSpec((tm, Cp), lambda i: (i, 0)),
                  pl.BlockSpec((tm, Cp), lambda i: (i, 0)),
                  vec, vec, vec, vec],
        out_specs=pl.BlockSpec((tm, Cp), lambda i: (i, 0)),
        out_shape=jax.ShapeDtypeStruct((Mp, Cp), jnp.float32),
        compiler_params=_mosaic_params(("parallel",), vmem_est),
        cost_estimate=pl.CostEstimate(flops=6 * Mp * Cp, transcendentals=0,
                                      bytes_accessed=bytes_accessed),
    )(y2, s, sc2, sh2, sc3, sh3)


# ---------------------------------------------------------------------------
# Wrapper-side glue: patch matrix, BN stat merge, parameter packing
# ---------------------------------------------------------------------------
def _im2col(x_nhwc, kh, kw, stride, pad):
    """Patch matrix (M, kh*kw*C); built directly from the bf16 input (single pad+cast)."""
    n, h, w, c = x_nhwc.shape
    ho = (h + 2 * pad - kh) // stride + 1
    wo = (w + 2 * pad - kw) // stride + 1
    xp = jnp.pad(x_nhwc, ((0, 0), (pad, pad), (pad, pad), (0, 0)))
    taps = []
    for i in range(kh):
        for j in range(kw):
            taps.append(xp[:, i:i + (ho - 1) * stride + 1:stride,
                              j:j + (wo - 1) * stride + 1:stride, :])
    cols = jnp.stack(taps, axis=3)                     # (N, Ho, Wo, kh*kw, C)
    return cols.reshape(n * ho * wo, kh * kw * c), ho, wo


def _build_w13(w1, w3, in_ch, out_ch, K1p, Cp):
    """Combined stage-1 weights: cols [0,Cp)=conv7x7, cols [Cp,2Cp)=1x1 skip on the centre tap."""
    w1_2d = w1.reshape(-1, out_ch)                                     # (49*Cin, Cout)
    w1_p = jnp.zeros((K1p, Cp), jnp.float32).at[:w1_2d.shape[0], :out_ch].set(w1_2d)
    w3_2d = w3.reshape(in_ch, out_ch)
    centre = (3 * 7 + 3) * in_ch                                       # tap (3,3) of the 7x7 patch
    w3_p = jnp.zeros((K1p, Cp), jnp.float32).at[centre:centre + in_ch, :out_ch].set(w3_2d)
    return jnp.concatenate([w1_p, w3_p], axis=1).astype(jnp.bfloat16)


def _merge_bn_stats(sums, m2s, counts, total):
    """Chan/Welford merge of per-tile (sum, centred-M2) partials -> global mean / biased var."""
    mean = jnp.sum(sums, axis=0) / total
    mu_i = sums / counts[:, None]
    m2 = jnp.sum(m2s, axis=0) + jnp.sum(counts[:, None] * (mu_i - mean) ** 2, axis=0)
    return mean, m2 / total


def _fold_bn(gamma, beta, mean, var, out_ch, Cp):
    g = jnp.zeros((Cp,), jnp.float32).at[:out_ch].set(gamma.astype(jnp.float32))
    b = jnp.zeros((Cp,), jnp.float32).at[:out_ch].set(beta.astype(jnp.float32))
    scale = g * lax.rsqrt(var + EPS)
    shift = b - mean * scale
    return scale.reshape(1, Cp), shift.reshape(1, Cp)


def init_params(key, in_ch, out_ch):
    ks = jax.random.split(key, 6)

    def conv_w(k, kh, kw, cin, cout):            # HWIO layout
        return jax.random.normal(k, (kh, kw, cin, cout), jnp.float32) / jnp.sqrt(kh * kw * cin)

    p = {
        "w1": conv_w(ks[0], 7, 7, in_ch, out_ch),
        "b1": 0.1 * jax.random.normal(ks[1], (out_ch,), jnp.float32),
        "w2": conv_w(ks[2], 3, 3, out_ch, out_ch),
        "b2": 0.1 * jax.random.normal(ks[3], (out_ch,), jnp.float32),
        "w3": conv_w(ks[4], 1, 1, in_ch, out_ch),
        "b3": 0.1 * jax.random.normal(ks[5], (out_ch,), jnp.float32),
    }
    for n in ("1", "2", "3"):                    # BN affine params (deterministic)
        p["g" + n] = 1.0 + 0.05 * jnp.arange(out_ch, dtype=jnp.float32)
        p["be" + n] = 0.02 * jnp.arange(out_ch, dtype=jnp.float32)
    return p


def resblock_forward(x_nchw, p, stride, *, tile_m=512):
    """ResBlock forward.  tile_m = rows per grid step (>=512 for v5e/v6e, ~256 for v7x's
    64 MiB VMEM); shrink it to exercise the multi-tile BN accumulate/finalize path."""
    n_batch = x_nchw.shape[0]
    in_ch = p["w1"].shape[2]
    out_ch = p["w1"].shape[-1]
    Cp = _round_up(out_ch, LANE)                                   # lane-dense channels

    x = jnp.transpose(x_nchw, (0, 2, 3, 1)).astype(jnp.bfloat16)   # NCHW->NHWC, bf16 once

    # ---- stage 1: conv7x7(stride, pad=3) with the 1x1-stride-s skip fused in --------------
    col1, Ho, Wo = _im2col(x, 7, 7, stride, 3)
    M = n_batch * Ho * Wo
    K1 = col1.shape[1]
    K1p = _round_up(K1, LANE)
    tm = min(_round_up(tile_m, 8), _round_up(M, 8))
    Mp = _round_up(M, tm)
    nt = Mp // tm
    col1 = jnp.pad(col1, ((0, Mp - M), (0, K1p - K1)))             # zero pad is inert in dot
    w13 = _build_w13(p["w1"], p["w3"], in_ch, out_ch, K1p, Cp)

    y1, skip, st1 = _stage1(col1, w13, tm=tm, nt=nt, Mp=Mp, K1p=K1p, Cp=Cp, m_real=M)

    counts = jnp.clip(M - jnp.arange(nt) * tm, 1, tm).astype(jnp.float32)
    mean1, var1 = _merge_bn_stats(st1[:, 0], st1[:, 1], counts, M)
    mean3, var3 = _merge_bn_stats(st1[:, 2], st1[:, 3], counts, M)
    sc1, sh1 = _fold_bn(p["g1"], p["be1"], mean1, var1, out_ch, Cp)
    sc3, sh3 = _fold_bn(p["g3"], p["be3"], mean3, var3, out_ch, Cp)

    # ---- BN1 + ReLU finalize (bf16 writeback feeds the stage-2 MXU) ------------------------
    h1 = _bn_relu(y1, sc1, sh1, tm=tm, nt=nt, Mp=Mp, Cp=Cp)

    # ---- stage 2: conv3x3(pad=1), patches built in-kernel from the halo'd image ------------
    h1_img = h1[:M].reshape(n_batch, Ho, Wo, Cp)
    h1_pad = jnp.pad(h1_img, ((0, 0), (1, 1), (1, 1), (0, 0)))
    # TODO(synk): fold this spatial zero-pad into the finalize kernel's output spec.
    w2 = (jnp.zeros((3, 3, Cp, Cp), jnp.float32)
          .at[:, :, :out_ch, :out_ch].set(p["w2"].astype(jnp.float32))
          .reshape(9, Cp, Cp).astype(jnp.bfloat16))
    y2, st2 = _stage2(h1_pad, w2, n=n_batch, Ho=Ho, Wo=Wo, Cp=Cp)

    counts2 = jnp.full((n_batch,), Ho * Wo, jnp.float32)
    mean2, var2 = _merge_bn_stats(st2[:, 0], st2[:, 1], counts2, M)
    sc2, sh2 = _fold_bn(p["g2"], p["be2"], mean2, var2, out_ch, Cp)

    # ---- tail: relu(BN2(y2)) + BN3(skip) ----------------------------------------------------
    y2p = jnp.pad(y2, ((0, Mp - M), (0, 0)))
    out = _tail(y2p, skip, sc2, sh2, sc3, sh3, tm=tm, nt=nt, Mp=Mp, Cp=Cp)

    out = out[:M, :out_ch].reshape(n_batch, Ho, Wo, out_ch)
    return jnp.transpose(out, (0, 3, 1, 2))                        # NHWC -> NCHW


# ---------------------------------------------------------------------------
# Pure-JAX references
# ---------------------------------------------------------------------------
def _q(a):
    return a.astype(jnp.bfloat16).astype(jnp.float32)


def _bn_train(y, gamma, beta):
    mean = jnp.mean(y, axis=(0, 1, 2), keepdims=True)
    var = jnp.mean((y - mean) ** 2, axis=(0, 1, 2), keepdims=True)
    return (y - mean) * lax.rsqrt(var + EPS) * gamma + beta


def resblock_reference(x_nchw, p, stride, *, mirror_kernel=True):
    """mirror_kernel=True : bf16-quantise conv outputs (as the kernels store them) and drop
    conv biases (training-mode BN subtracts the mean, so they cancel exactly) -> tight check.
    mirror_kernel=False: keep biases and full-f32 BN ('module-faithful' math); differences vs
    the kernel are bounded by bf16 storage rounding of the conv outputs."""
    x = jnp.transpose(x_nchw, (0, 2, 3, 1)).astype(jnp.float32)

    def conv(inp, w, b, s, pad):
        y = lax.conv_general_dilated(_q(inp), _q(w), (s, s), [(pad, pad), (pad, pad)],
                                     dimension_numbers=("NHWC", "HWIO", "NHWC"),
                                     preferred_element_type=jnp.float32)
        return _q(y) if mirror_kernel else y + b

    h = jnp.maximum(_bn_train(conv(x, p["w1"], p["b1"], stride, 3), p["g1"], p["be1"]), 0.0)
    h = jnp.maximum(_bn_train(conv(h, p["w2"], p["b2"], 1, 1), p["g2"], p["be2"]), 0.0)
    s = _bn_train(conv(x, p["w3"], p["b3"], stride, 0), p["g3"], p["be3"])
    return jnp.transpose(h + s, (0, 3, 1, 2))


if __name__ == "__main__":
    key = jax.random.PRNGKey(0)
    kx, kp = jax.random.split(key)

    N, in_ch, H, W = 2, 4, 16, 16
    out_ch, stride = 8, 2

    x = jax.random.normal(kx, (N, in_ch, H, W), jnp.float32)
    params = init_params(kp, in_ch, out_ch)

    # tile_m=64 at these toy sizes so the grid has >1 step and the multi-tile BN
    # accumulate/finalize (Chan merge) path is exercised; use >=512 at real sizes.
    fwd = jax.jit(lambda a, b: resblock_forward(a, b, stride, tile_m=64))
    out = jax.block_until_ready(fwd(x, params))
    assert out.shape == (N, out_ch, H // stride, W // stride), out.shape

    # Tight check against a reference with identical quantisation semantics.
    ref_tight = jax.block_until_ready(
        jax.jit(lambda a, b: resblock_reference(a, b, stride, mirror_kernel=True))(x, params))
    np.testing.assert_allclose(np.asarray(out), np.asarray(ref_tight), rtol=2e-3, atol=2e-3)

    # Looser sanity check against module-faithful f32 math (bias kept, no bf16 storage);
    # differences are purely bf16-storage rounding of the conv outputs.
    ref_full = jax.block_until_ready(
        jax.jit(lambda a, b: resblock_reference(a, b, stride, mirror_kernel=False))(x, params))
    np.testing.assert_allclose(np.asarray(out), np.asarray(ref_full), rtol=1e-1, atol=1e-1)

    print("KERNEL_OK")
</pallas_src>

<mosaic_0001>
module attributes {stable_mosaic.version = 11 : i64} {
  func.func @kernel(%arg0: i32, %arg1: memref<64x256xbf16, #tpu.memory_space<vmem>>, %arg2: memref<256x256xbf16, #tpu.memory_space<vmem>>, %arg3: memref<64x128xbf16, #tpu.memory_space<vmem>>, %arg4: memref<64x128xbf16, #tpu.memory_space<vmem>>, %arg5: memref<1x4x128xf32, #tpu.memory_space<vmem>>) attributes {dimension_semantics = [#tpu.dimension_semantics<parallel>], iteration_bounds = array<i64: 2>, scalar_prefetch = 0 : i64, scratch_operands = 0 : i64, tpu.core_type = #tpu.core_type<tc>, window_params = [{transform_indices = @transform_0, window_bounds = array<i64: 64, 256>}, {pipeline_mode = #tpu.pipeline_mode<synchronous>, transform_indices = @transform_1, window_bounds = array<i64: 256, 256>}, {transform_indices = @transform_2, window_bounds = array<i64: 64, 128>}, {transform_indices = @transform_3, window_bounds = array<i64: 64, 128>}, {transform_indices = @transform_4, window_bounds = array<i64: 1, 4, 128>}]} {
    %c0 = arith.constant 0 : index
    %c0_0 = arith.constant 0 : index
    %0 = vector.load %arg1[%c0, %c0_0] : memref<64x256xbf16, #tpu.memory_space<vmem>>, vector<64x256xbf16>
    %c0_1 = arith.constant 0 : index
    %c0_2 = arith.constant 0 : index
    %1 = vector.load %arg2[%c0_1, %c0_2] : memref<256x256xbf16, #tpu.memory_space<vmem>>, vector<256x256xbf16>
    %cst = arith.constant dense<0.000000e+00> : vector<64x256xf32>
    %2 = tpu.matmul %0, %1, %cst {dimension_numbers = #tpu.dot_dimension_numbers<[1], [0], [0], [1], [0, 0, 1, 1], [], []>} : vector<64x256xbf16>, vector<256x256xbf16>, vector<64x256xf32> -> vector<64x256xf32>
    %3 = vector.extract_strided_slice %2 {offsets = [0, 0], sizes = [64, 128], strides = [1, 1]} : vector<64x256xf32> to vector<64x128xf32>
    %4 = arith.truncf %3 : vector<64x128xf32> to vector<64x128xbf16>
    %5 = vector.extract_strided_slice %2 {offsets = [0, 128], sizes = [64, 128], strides = [1, 1]} : vector<64x256xf32> to vector<64x128xf32>
    %6 = arith.truncf %5 : vector<64x128xf32> to vector<64x128xbf16>
    %c0_3 = arith.constant 0 : index
    %c0_4 = arith.constant 0 : index
    %7 = vector.load %arg3[%c0_3, %c0_4] : memref<64x128xbf16, #tpu.memory_space<vmem>>, vector<64x128xbf16>
    tpu.vector_store %arg3[%c0_3, %c0_4], %4 {strides = array<i32>} : memref<64x128xbf16, #tpu.memory_space<vmem>>, vector<64x128xbf16>,
    %c0_5 = arith.constant 0 : index
    %c0_6 = arith.constant 0 : index
    %8 = vector.load %arg4[%c0_5, %c0_6] : memref<64x128xbf16, #tpu.memory_space<vmem>>, vector<64x128xbf16>
    tpu.vector_store %arg4[%c0_5, %c0_6], %6 {strides = array<i32>} : memref<64x128xbf16, #tpu.memory_space<vmem>>, vector<64x128xbf16>,
    %c64_i32 = arith.constant 64 : i32
    %9 = arith.muli %arg0, %c64_i32 : i32
    %c128_i32 = arith.constant 128 : i32
    %10 = arith.subi %c128_i32, %9 : i32
    %c64_i32_7 = arith.constant 64 : i32
    %11 = arith.minsi %c64_i32_7, %10 : i32
    %12 = arith.sitofp %11 : i32 to f32
    %cst_8 = arith.constant 6.400000e+01 : f32
    %13 = arith.subf %cst_8, %12 : f32
    %14 = arith.extf %4 : vector<64x128xbf16> to vector<64x128xf32>
    %cst_9 = arith.constant dense<0.000000e+00> : vector<128xf32>
    %15 = vector.multi_reduction <add>, %14, %cst_9 [0] : vector<64x128xf32> to vector<128xf32>
    %16 = vector.shape_cast %15 : vector<128xf32> to vector<1x128xf32>
    %17 = vector.broadcast %12 : f32 to vector<1x128xf32>
    %18 = arith.divf %16, %17 : vector<1x128xf32>
    %19 = vector.broadcast %18 : vector<1x128xf32> to vector<64x128xf32>
    %20 = arith.subf %14, %19 : vector<64x128xf32>
    %21 = arith.mulf %20, %20 : vector<64x128xf32>
    %cst_10 = arith.constant dense<0.000000e+00> : vector<128xf32>
    %22 = vector.multi_reduction <add>, %21, %cst_10 [0] : vector<64x128xf32> to vector<128xf32>
    %23 = vector.shape_cast %22 : vector<128xf32> to vector<1x128xf32>
    %24 = vector.broadcast %13 : f32 to vector<1x128xf32>
    %25 = arith.mulf %24, %18 : vector<1x128xf32>
    %26 = arith.mulf %25, %18 : vector<1x128xf32>
    %27 = arith.subf %23, %26 : vector<1x128xf32>
    %28 = arith.extf %6 : vector<64x128xbf16> to vector<64x128xf32>
    %cst_11 = arith.constant dense<0.000000e+00> : vector<128xf32>
    %29 = vector.multi_reduction <add>, %28, %cst_11 [0] : vector<64x128xf32> to vector<128xf32>
    %30 = vector.shape_cast %29 : vector<128xf32> to vector<1x128xf32>
    %31 = vector.broadcast %12 : f32 to vector<1x128xf32>
    %32 = arith.divf %30, %31 : vector<1x128xf32>
    %33 = vector.broadcast %32 : vector<1x128xf32> to vector<64x128xf32>
    %34 = arith.subf %28, %33 : vector<64x128xf32>
    %35 = arith.mulf %34, %34 : vector<64x128xf32>
    %cst_12 = arith.constant dense<0.000000e+00> : vector<128xf32>
    %36 = vector.multi_reduction <add>, %35, %cst_12 [0] : vector<64x128xf32> to vector<128xf32>
    %37 = vector.shape_cast %36 : vector<128xf32> to vector<1x128xf32>
    %38 = vector.broadcast %13 : f32 to vector<1x128xf32>
    %39 = arith.mulf %38, %32 : vector<1x128xf32>
    %40 = arith.mulf %39, %32 : vector<1x128xf32>
    %41 = arith.subf %37, %40 : vector<1x128xf32>
    %42 = tpu.concatenate %16, %27, %30, %41 in 0 : vector<1x128xf32>, vector<1x128xf32>, vector<1x128xf32>, vector<1x128xf32> -> vector<4x128xf32>
    %c0_13 = arith.constant 0 : index
    %c0_14 = arith.constant 0 : index
    %c0_15 = arith.constant 0 : index
    %43 = vector.load %arg5[%c0_13, %c0_14, %c0_15] : memref<1x4x128xf32, #tpu.memory_space<vmem>>, vector<1x4x128xf32>
    %44 = vector.shape_cast %43 : vector<1x4x128xf32> to vector<4x128xf32>
    %45 = vector.shape_cast %42 : vector<4x128xf32> to vector<1x4x128xf32>
    tpu.vector_store %arg5[%c0_13, %c0_14, %c0_15], %45 {strides = array<i32>} : memref<1x4x128xf32, #tpu.memory_space<vmem>>, vector<1x4x128xf32>,
    return
  }
  func.func @transform_0(%arg0: i32) -> (i32, i32) {
    %c0_i32 = arith.constant 0 : i32
    %c0_i32_0 = arith.constant 0 : i32
    return %arg0, %c0_i32 : i32, i32
  }
  func.func @transform_1(%arg0: i32) -> (i32, i32) {
    %c0_i32 = arith.constant 0 : i32
    %c0_i32_0 = arith.constant 0 : i32
    %c0_i32_1 = arith.constant 0 : i32
    return %c0_i32, %c0_i32_0 : i32, i32
  }
  func.func @transform_2(%arg0: i32) -> (i32, i32) {
    %c0_i32 = arith.constant 0 : i32
    %c0_i32_0 = arith.constant 0 : i32
    return %arg0, %c0_i32 : i32, i32
  }
  func.func @transform_3(%arg0: i32) -> (i32, i32) {
    %c0_i32 = arith.constant 0 : i32
    %c0_i32_0 = arith.constant 0 : i32
    return %arg0, %c0_i32 : i32, i32
  }
  func.func @transform_4(%arg0: i32) -> (i32, i32, i32) {
    %c0_i32 = arith.constant 0 : i32
    %c0_i32_0 = arith.constant 0 : i32
    %c0_i32_1 = arith.constant 0 : i32
    return %arg0, %c0_i32, %c0_i32_0 : i32, i32, i32
  }
}

module attributes {stable_mosaic.version = 11 : i64} {
  func.func @_bn_relu_kernel(%arg0: i32, %arg1: memref<64x128xbf16, #tpu.memory_space<vmem>>, %arg2: memref<1x128xf32, #tpu.memory_space<vmem>>, %arg3: memref<1x128xf32, #tpu.memory_space<vmem>>, %arg4: memref<64x128xbf16, #tpu.memory_space<vmem>>) attributes {dimension_semantics = [#tpu.dimension_semantics<parallel>], iteration_bounds = array<i64: 2>, scalar_prefetch = 0 : i64, scratch_operands = 0 : i64, tpu.core_type = #tpu.core_type<tc>, window_params = [{transform_indices = @transform_0, window_bounds = array<i64: 64, 128>}, {pipeline_mode = #tpu.pipeline_mode<synchronous>, transform_indices = @transform_1, window_bounds = array<i64: 1, 128>}, {pipeline_mode = #tpu.pipeline_mode<synchronous>, transform_indices = @transform_2, window_bounds = array<i64: 1, 128>}, {transform_indices = @transform_3, window_bounds = array<i64: 64, 128>}]} {
    %c0 = arith.constant 0 : index
    %c0_0 = arith.constant 0 : index
    %0 = vector.load %arg1[%c0, %c0_0] : memref<64x128xbf16, #tpu.memory_space<vmem>>, vector<64x128xbf16>
    %1 = arith.extf %0 : vector<64x128xbf16> to vector<64x128xf32>
    %c0_1 = arith.constant 0 : index
    %c0_2 = arith.constant 0 : index
    %2 = vector.load %arg2[%c0_1, %c0_2] : memref<1x128xf32, #tpu.memory_space<vmem>>, vector<1x128xf32>
    %3 = vector.broadcast %2 : vector<1x128xf32> to vector<64x128xf32>
    %4 = arith.mulf %1, %3 : vector<64x128xf32>
    %c0_3 = arith.constant 0 : index
    %c0_4 = arith.constant 0 : index
    %5 = vector.load %arg3[%c0_3, %c0_4] : memref<1x128xf32, #tpu.memory_space<vmem>>, vector<1x128xf32>
    %6 = vector.broadcast %5 : vector<1x128xf32> to vector<64x128xf32>
    %7 = arith.addf %4, %6 : vector<64x128xf32>
    %cst = arith.constant 0.000000e+00 : f32
    %8 = vector.broadcast %cst : f32 to vector<64x128xf32>
    %9 = arith.maximumf %7, %8 : vector<64x128xf32>
    %10 = arith.truncf %9 : vector<64x128xf32> to vector<64x128xbf16>
    %c0_5 = arith.constant 0 : index
    %c0_6 = arith.constant 0 : index
    %11 = vector.load %arg4[%c0_5, %c0_6] : memref<64x128xbf16, #tpu.memory_space<vmem>>, vector<64x128xbf16>
    tpu.vector_store %arg4[%c0_5, %c0_6], %10 {strides = array<i32>} : memref<64x128xbf16, #tpu.memory_space<vmem>>, vector<64x128xbf16>,
    return
  }
  func.func @transform_0(%arg0: i32) -> (i32, i32) {
    %c0_i32 = arith.constant 0 : i32
    %c0_i32_0 = arith.constant 0 : i32
    return %arg0, %c0_i32 : i32, i32
  }
  func.func @transform_1(%arg0: i32) -> (i32, i32) {
    %c0_i32 = arith.constant 0 : i32
    %c0_i32_0 = arith.constant 0 : i32
    %c0_i32_1 = arith.constant 0 : i32
    return %c0_i32, %c0_i32_0 : i32, i32
  }
  func.func @transform_2(%arg0: i32) -> (i32, i32) {
    %c0_i32 = arith.constant 0 : i32
    %c0_i32_0 = arith.constant 0 : i32
    %c0_i32_1 = arith.constant 0 : i32
    return %c0_i32, %c0_i32_0 : i32, i32
  }
  func.func @transform_3(%arg0: i32) -> (i32, i32) {
    %c0_i32 = arith.constant 0 : i32
    %c0_i32_0 = arith.constant 0 : i32
    return %arg0, %c0_i32 : i32, i32
  }
}

module attributes {stable_mosaic.version = 11 : i64} {
  func.func @kernel(%arg0: i32, %arg1: memref<1x10x10x128xbf16, #tpu.memory_space<vmem>>, %arg2: memref<9x128x128xbf16, #tpu.memory_space<vmem>>, %arg3: memref<64x128xbf16, #tpu.memory_space<vmem>>, %arg4: memref<1x2x128xf32, #tpu.memory_space<vmem>>) attributes {dimension_semantics = [#tpu.dimension_semantics<parallel>], iteration_bounds = array<i64: 2>, scalar_prefetch = 0 : i64, scratch_operands = 0 : i64, tpu.core_type = #tpu.core_type<tc>, window_params = [{transform_indices = @transform_0, window_bounds = array<i64: 1, 10, 10, 128>}, {pipeline_mode = #tpu.pipeline_mode<synchronous>, transform_indices = @transform_1, window_bounds = array<i64: 9, 128, 128>}, {transform_indices = @transform_2, window_bounds = array<i64: 64, 128>}, {transform_indices = @transform_3, window_bounds = array<i64: 1, 2, 128>}]} {
    %c0 = arith.constant 0 : index
    %c0_0 = arith.constant 0 : index
    %c0_1 = arith.constant 0 : index
    %c0_2 = arith.constant 0 : index
    %0 = vector.load %arg1[%c0, %c0_0, %c0_1, %c0_2] : memref<1x10x10x128xbf16, #tpu.memory_space<vmem>>, vector<1x10x10x128xbf16>
    %1 = vector.shape_cast %0 : vector<1x10x10x128xbf16> to vector<10x10x128xbf16>
    %cst = arith.constant 0.000000e+00 : f32
    %2 = vector.broadcast %cst : f32 to vector<64x128xf32>
    %3 = vector.extract_strided_slice %1 {offsets = [0, 0, 0], sizes = [10, 8, 128], strides = [1, 1, 1]} : vector<10x10x128xbf16> to vector<10x8x128xbf16>
    %4 = vector.shape_cast %3 : vector<10x8x128xbf16> to vector<80x128xbf16>
    %5 = vector.extract_strided_slice %4 {offsets = [0, 0], sizes = [64, 128], strides = [1, 1]} : vector<80x128xbf16> to vector<64x128xbf16>
    %c0_3 = arith.constant 0 : index
    %c0_4 = arith.constant 0 : index
    %c0_5 = arith.constant 0 : index
    %6 = vector.load %arg2[%c0_3, %c0_4, %c0_5] : memref<9x128x128xbf16, #tpu.memory_space<vmem>>, vector<1x128x128xbf16>
    %7 = vector.shape_cast %6 : vector<1x128x128xbf16> to vector<128x128xbf16>
    %cst_6 = arith.constant dense<0.000000e+00> : vector<64x128xf32>
    %8 = tpu.matmul %5, %7, %cst_6 {dimension_numbers = #tpu.dot_dimension_numbers<[1], [0], [0], [1], [0, 0, 1, 1], [], []>} : vector<64x128xbf16>, vector<128x128xbf16>, vector<64x128xf32> -> vector<64x128xf32>
    %9 = arith.addf %2, %8 : vector<64x128xf32>
    %10 = vector.extract_strided_slice %4 {offsets = [8, 0], sizes = [64, 128], strides = [1, 1]} : vector<80x128xbf16> to vector<64x128xbf16>
    %c3 = arith.constant 3 : index
    %c0_7 = arith.constant 0 : index
    %c0_8 = arith.constant 0 : index
    %11 = vector.load %arg2[%c3, %c0_7, %c0_8] : memref<9x128x128xbf16, #tpu.memory_space<vmem>>, vector<1x128x128xbf16>
    %12 = vector.shape_cast %11 : vector<1x128x128xbf16> to vector<128x128xbf16>
    %cst_9 = arith.constant dense<0.000000e+00> : vector<64x128xf32>
    %13 = tpu.matmul %10, %12, %cst_9 {dimension_numbers = #tpu.dot_dimension_numbers<[1], [0], [0], [1], [0, 0, 1, 1], [], []>} : vector<64x128xbf16>, vector<128x128xbf16>, vector<64x128xf32> -> vector<64x128xf32>
    %14 = arith.addf %9, %13 : vector<64x128xf32>
    %15 = vector.extract_strided_slice %4 {offsets = [16, 0], sizes = [64, 128], strides = [1, 1]} : vector<80x128xbf16> to vector<64x128xbf16>
    %c6 = arith.constant 6 : index
    %c0_10 = arith.constant 0 : index
    %c0_11 = arith.constant 0 : index
    %16 = vector.load %arg2[%c6, %c0_10, %c0_11] : memref<9x128x128xbf16, #tpu.memory_space<vmem>>, vector<1x128x128xbf16>
    %17 = vector.shape_cast %16 : vector<1x128x128xbf16> to vector<128x128xbf16>
    %cst_12 = arith.constant dense<0.000000e+00> : vector<64x128xf32>
    %18 = tpu.matmul %15, %17, %cst_12 {dimension_numbers = #tpu.dot_dimension_numbers<[1], [0], [0], [1], [0, 0, 1, 1], [], []>} : vector<64x128xbf16>, vector<128x128xbf16>, vector<64x128xf32> -> vector<64x128xf32>
    %19 = arith.addf %14, %18 : vector<64x128xf32>
    %20 = vector.extract_strided_slice %1 {offsets = [0, 1, 0], sizes = [10, 8, 128], strides = [1, 1, 1]} : vector<10x10x128xbf16> to vector<10x8x128xbf16>
    %21 = vector.shape_cast %20 : vector<10x8x128xbf16> to vector<80x128xbf16>
    %22 = vector.extract_strided_slice %21 {offsets = [0, 0], sizes = [64, 128], strides = [1, 1]} : vector<80x128xbf16> to vector<64x128xbf16>
    %c1 = arith.constant 1 : index
    %c0_13 = arith.constant 0 : index
    %c0_14 = arith.constant 0 : index
    %23 = vector.load %arg2[%c1, %c0_13, %c0_14] : memref<9x128x128xbf16, #tpu.memory_space<vmem>>, vector<1x128x128xbf16>
    %24 = vector.shape_cast %23 : vector<1x128x128xbf16> to vector<128x128xbf16>
    %cst_15 = arith.constant dense<0.000000e+00> : vector<64x128xf32>
    %25 = tpu.matmul %22, %24, %cst_15 {dimension_numbers = #tpu.dot_dimension_numbers<[1], [0], [0], [1], [0, 0, 1, 1], [], []>} : vector<64x128xbf16>, vector<128x128xbf16>, vector<64x128xf32> -> vector<64x128xf32>
    %26 = arith.addf %19, %25 : vector<64x128xf32>
    %27 = vector.extract_strided_slice %21 {offsets = [8, 0], sizes = [64, 128], strides = [1, 1]} : vector<80x128xbf16> to vector<64x128xbf16>
    %c4 = arith.constant 4 : index
    %c0_16 = arith.constant 0 : index
    %c0_17 = arith.constant 0 : index
    %28 = vector.load %arg2[%c4, %c0_16, %c0_17] : memref<9x128x128xbf16, #tpu.memory_space<vmem>>, vector<1x128x128xbf16>
    %29 = vector.shape_cast %28 : vector<1x128x128xbf16> to vector<128x128xbf16>
    %cst_18 = arith.constant dense<0.000000e+00> : vector<64x128xf32>
    %30 = tpu.matmul %27, %29, %cst_18 {dimension_numbers = #tpu.dot_dimension_numbers<[1], [0], [0], [1], [0, 0, 1, 1], [], []>} : vector<64x128xbf16>, vector<128x128xbf16>, vector<64x128xf32> -> vector<64x128xf32>
    %31 = arith.addf %26, %30 : vector<64x128xf32>
    %32 = vector.extract_strided_slice %21 {offsets = [16, 0], sizes = [64, 128], strides = [1, 1]} : vector<80x128xbf16> to vector<64x128xbf16>
    %c7 = arith.constant 7 : index
    %c0_19 = arith.constant 0 : index
    %c0_20 = arith.constant 0 : index
    %33 = vector.load %arg2[%c7, %c0_19, %c0_20] : memref<9x128x128xbf16, #tpu.memory_space<vmem>>, vector<1x128x128xbf16>
    %34 = vector.shape_cast %33 : vector<1x128x128xbf16> to vector<128x128xbf16>
    %cst_21 = arith.constant dense<0.000000e+00> : vector<64x128xf32>
    %35 = tpu.matmul %32, %34, %cst_21 {dimension_numbers = #tpu.dot_dimension_numbers<[1], [0], [0], [1], [0, 0, 1, 1], [], []>} : vector<64x128xbf16>, vector<128x128xbf16>, vector<64x128xf32> -> vector<64x128xf32>
    %36 = arith.addf %31, %35 : vector<64x128xf32>
    %37 = vector.extract_strided_slice %1 {offsets = [0, 2, 0], sizes = [10, 8, 128], strides = [1, 1, 1]} : vector<10x10x128xbf16> to vector<10x8x128xbf16>
    %38 = vector.shape_cast %37 : vector<10x8x128xbf16> to vector<80x128xbf16>
    %39 = vector.extract_strided_slice %38 {offsets = [0, 0], sizes = [64, 128], strides = [1, 1]} : vector<80x128xbf16> to vector<64x128xbf16>
    %c2 = arith.constant 2 : index
    %c0_22 = arith.constant 0 : index
    %c0_23 = arith.constant 0 : index
    %40 = vector.load %arg2[%c2, %c0_22, %c0_23] : memref<9x128x128xbf16, #tpu.memory_space<vmem>>, vector<1x128x128xbf16>
    %41 = vector.shape_cast %40 : vector<1x128x128xbf16> to vector<128x128xbf16>
    %cst_24 = arith.constant dense<0.000000e+00> : vector<64x128xf32>
    %42 = tpu.matmul %39, %41, %cst_24 {dimension_numbers = #tpu.dot_dimension_numbers<[1], [0], [0], [1], [0, 0, 1, 1], [], []>} : vector<64x128xbf16>, vector<128x128xbf16>, vector<64x128xf32> -> vector<64x128xf32>
    %43 = arith.addf %36, %42 : vector<64x128xf32>
    %44 = vector.extract_strided_slice %38 {offsets = [8, 0], sizes = [64, 128], strides = [1, 1]} : vector<80x128xbf16> to vector<64x128xbf16>
    %c5 = arith.constant 5 : index
    %c0_25 = arith.constant 0 : index
    %c0_26 = arith.constant 0 : index
    %45 = vector.load %arg2[%c5, %c0_25, %c0_26] : memref<9x128x128xbf16, #tpu.memory_space<vmem>>, vector<1x128x128xbf16>
    %46 = vector.shape_cast %45 : vector<1x128x128xbf16> to vector<128x128xbf16>
    %cst_27 = arith.constant dense<0.000000e+00> : vector<64x128xf32>
    %47 = tpu.matmul %44, %46, %cst_27 {dimension_numbers = #tpu.dot_dimension_numbers<[1], [0], [0], [1], [0, 0, 1, 1], [], []>} : vector<64x128xbf16>, vector<128x128xbf16>, vector<64x128xf32> -> vector<64x128xf32>
    %48 = arith.addf %43, %47 : vector<64x128xf32>
    %49 = vector.extract_strided_slice %38 {offsets = [16, 0], sizes = [64, 128], strides = [1, 1]} : vector<80x128xbf16> to vector<64x128xbf16>
    %c8 = arith.constant 8 : index
    %c0_28 = arith.constant 0 : index
    %c0_29 = arith.constant 0 : index
    %50 = vector.load %arg2[%c8, %c0_28, %c0_29] : memref<9x128x128xbf16, #tpu.memory_space<vmem>>, vector<1x128x128xbf16>
    %51 = vector.shape_cast %50 : vector<1x128x128xbf16> to vector<128x128xbf16>
    %cst_30 = arith.constant dense<0.000000e+00> : vector<64x128xf32>
    %52 = tpu.matmul %49, %51, %cst_30 {dimension_numbers = #tpu.dot_dimension_numbers<[1], [0], [0], [1], [0, 0, 1, 1], [], []>} : vector<64x128xbf16>, vector<128x128xbf16>, vector<64x128xf32> -> vector<64x128xf32>
    %53 = arith.addf %48, %52 : vector<64x128xf32>
    %54 = arith.truncf %53 : vector<64x128xf32> to vector<64x128xbf16>
    %c0_31 = arith.constant 0 : index
    %c0_32 = arith.constant 0 : index
    %55 = vector.load %arg3[%c0_31, %c0_32] : memref<64x128xbf16, #tpu.memory_space<vmem>>, vector<64x128xbf16>
    tpu.vector_store %arg3[%c0_31, %c0_32], %54 {strides = array<i32>} : memref<64x128xbf16, #tpu.memory_space<vmem>>, vector<64x128xbf16>,
    %56 = arith.extf %54 : vector<64x128xbf16> to vector<64x128xf32>
    %cst_33 = arith.constant dense<0.000000e+00> : vector<128xf32>
    %57 = vector.multi_reduction <add>, %56, %cst_33 [0] : vector<64x128xf32> to vector<128xf32>
    %58 = vector.shape_cast %57 : vector<128xf32> to vector<1x128xf32>
    %cst_34 = arith.constant 1.562500e-02 : f32
    %59 = vector.broadcast %cst_34 : f32 to vector<1x128xf32>
    %60 = arith.mulf %58, %59 : vector<1x128xf32>
    %61 = vector.broadcast %60 : vector<1x128xf32> to vector<64x128xf32>
    %62 = arith.subf %56, %61 : vector<64x128xf32>
    %63 = arith.mulf %62, %62 : vector<64x128xf32>
    %cst_35 = arith.constant dense<0.000000e+00> : vector<128xf32>
    %64 = vector.multi_reduction <add>, %63, %cst_35 [0] : vector<64x128xf32> to vector<128xf32>
    %65 = vector.shape_cast %64 : vector<128xf32> to vector<1x128xf32>
    %66 = tpu.concatenate %58, %65 in 0 : vector<1x128xf32>, vector<1x128xf32> -> vector<2x128xf32>
    %c0_36 = arith.constant 0 : index
    %c0_37 = arith.constant 0 : index
    %c0_38 = arith.constant 0 : index
    %67 = vector.load %arg4[%c0_36, %c0_37, %c0_38] : memref<1x2x128xf32, #tpu.memory_space<vmem>>, vector<1x2x128xf32>
    %68 = vector.shape_cast %67 : vector<1x2x128xf32> to vector<2x128xf32>
    %69 = vector.shape_cast %66 : vector<2x128xf32> to vector<1x2x128xf32>
    tpu.vector_store %arg4[%c0_36, %c0_37, %c0_38], %69 {strides = array<i32>} : memref<1x2x128xf32, #tpu.memory_space<vmem>>, vector<1x2x128xf32>,
    return
  }
  func.func @transform_0(%arg0: i32) -> (i32, i32, i32, i32) {
    %c0_i32 = arith.constant 0 : i32
    %c0_i32_0 = arith.constant 0 : i32
    %c0_i32_1 = arith.constant 0 : i32
    %c0_i32_2 = arith.constant 0 : i32
    return %arg0, %c0_i32, %c0_i32_0, %c0_i32_1 : i32, i32, i32, i32
  }
  func.func @transform_1(%arg0: i32) -> (i32, i32, i32) {
    %c0_i32 = arith.constant 0 : i32
    %c0_i32_0 = arith.constant 0 : i32
    %c0_i32_1 = arith.constant 0 : i32
    %c0_i32_2 = arith.constant 0 : i32
    return %c0_i32, %c0_i32_0, %c0_i32_1 : i32, i32, i32
  }
  func.func @transform_2(%arg0: i32) -> (i32, i32) {
    %c0_i32 = arith.constant 0 : i32
    %c0_i32_0 = arith.constant 0 : i32
    return %arg0, %c0_i32 : i32, i32
  }
  func.func @transform_3(%arg0: i32) -> (i32, i32, i32) {
    %c0_i32 = arith.constant 0 : i32
    %c0_i32_0 = arith.constant 0 : i32
    %c0_i32_1 = arith.constant 0 : i32
    return %arg0, %c0_i32, %c0_i32_0 : i32, i32, i32
  }
}

module attributes {stable_mosaic.version = 11 : i64} {
  func.func @_tail_kernel(%arg0: i32, %arg1: memref<64x128xbf16, #tpu.memory_space<vmem>>, %arg2: memref<64x128xbf16, #tpu.memory_space<vmem>>, %arg3: memref<1x128xf32, #tpu.memory_space<vmem>>, %arg4: memref<1x128xf32, #tpu.memory_space<vmem>>, %arg5: memref<1x128xf32, #tpu.memory_space<vmem>>, %arg6: memref<1x128xf32, #tpu.memory_space<vmem>>, %arg7: memref<64x128xf32, #tpu.memory_space<vmem>>) attributes {dimension_semantics = [#tpu.dimension_semantics<parallel>], iteration_bounds = array<i64: 2>, scalar_prefetch = 0 : i64, scratch_operands = 0 : i64, tpu.core_type = #tpu.core_type<tc>, window_params = [{transform_indices = @transform_0, window_bounds = array<i64: 64, 128>}, {transform_indices = @transform_1, window_bounds = array<i64: 64, 128>}, {pipeline_mode = #tpu.pipeline_mode<synchronous>, transform_indices = @transform_2, window_bounds = array<i64: 1, 128>}, {pipeline_mode = #tpu.pipeline_mode<synchronous>, transform_indices = @transform_3, window_bounds = array<i64: 1, 128>}, {pipeline_mode = #tpu.pipeline_mode<synchronous>, transform_indices = @transform_4, window_bounds = array<i64: 1, 128>}, {pipeline_mode = #tpu.pipeline_mode<synchronous>, transform_indices = @transform_5, window_bounds = array<i64: 1, 128>}, {transform_indices = @transform_6, window_bounds = array<i64: 64, 128>}]} {
    %c0 = arith.constant 0 : index
    %c0_0 = arith.constant 0 : index
    %0 = vector.load %arg2[%c0, %c0_0] : memref<64x128xbf16, #tpu.memory_space<vmem>>, vector<64x128xbf16>
    %1 = arith.extf %0 : vector<64x128xbf16> to vector<64x128xf32>
    %c0_1 = arith.constant 0 : index
    %c0_2 = arith.constant 0 : index
    %2 = vector.load %arg5[%c0_1, %c0_2] : memref<1x128xf32, #tpu.memory_space<vmem>>, vector<1x128xf32>
    %3 = vector.broadcast %2 : vector<1x128xf32> to vector<64x128xf32>
    %4 = arith.mulf %1, %3 : vector<64x128xf32>
    %c0_3 = arith.constant 0 : index
    %c0_4 = arith.constant 0 : index
    %5 = vector.load %arg6[%c0_3, %c0_4] : memref<1x128xf32, #tpu.memory_space<vmem>>, vector<1x128xf32>
    %6 = vector.broadcast %5 : vector<1x128xf32> to vector<64x128xf32>
    %7 = arith.addf %4, %6 : vector<64x128xf32>
    %c0_5 = arith.constant 0 : index
    %c0_6 = arith.constant 0 : index
    %8 = vector.load %arg1[%c0_5, %c0_6] : memref<64x128xbf16, #tpu.memory_space<vmem>>, vector<64x128xbf16>
    %9 = arith.extf %8 : vector<64x128xbf16> to vector<64x128xf32>
    %c0_7 = arith.constant 0 : index
    %c0_8 = arith.constant 0 : index
    %10 = vector.load %arg3[%c0_7, %c0_8] : memref<1x128xf32, #tpu.memory_space<vmem>>, vector<1x128xf32>
    %11 = vector.broadcast %10 : vector<1x128xf32> to vector<64x128xf32>
    %12 = arith.mulf %9, %11 : vector<64x128xf32>
    %c0_9 = arith.constant 0 : index
    %c0_10 = arith.constant 0 : index
    %13 = vector.load %arg4[%c0_9, %c0_10] : memref<1x128xf32, #tpu.memory_space<vmem>>, vector<1x128xf32>
    %14 = vector.broadcast %13 : vector<1x128xf32> to vector<64x128xf32>
    %15 = arith.addf %12, %14 : vector<64x128xf32>
    %cst = arith.constant 0.000000e+00 : f32
    %16 = vector.broadcast %cst : f32 to vector<64x128xf32>
    %17 = arith.maximumf %15, %16 : vector<64x128xf32>
    %18 = arith.addf %7, %17 : vector<64x128xf32>
    %c0_11 = arith.constant 0 : index
    %c0_12 = arith.constant 0 : index
    %19 = vector.load %arg7[%c0_11, %c0_12] : memref<64x128xf32, #tpu.memory_space<vmem>>, vector<64x128xf32>
    tpu.vector_store %arg7[%c0_11, %c0_12], %18 {strides = array<i32>} : memref<64x128xf32, #tpu.memory_space<vmem>>, vector<64x128xf32>,
    return
  }
  func.func @transform_0(%arg0: i32) -> (i32, i32) {
    %c0_i32 = arith.constant 0 : i32
    %c0_i32_0 = arith.constant 0 : i32
    return %arg0, %c0_i32 : i32, i32
  }
  func.func @transform_1(%arg0: i32) -> (i32, i32) {
    %c0_i32 = arith.constant 0 : i32
    %c0_i32_0 = arith.constant 0 : i32
    return %arg0, %c0_i32 : i32, i32
  }
  func.func @transform_2(%arg0: i32) -> (i32, i32) {
    %c0_i32 = arith.constant 0 : i32
    %c0_i32_0 = arith.constant 0 : i32
    %c0_i32_1 = arith.constant 0 : i32
    return %c0_i32, %c0_i32_0 : i32, i32
  }
  func.func @transform_3(%arg0: i32) -> (i32, i32) {
    %c0_i32 = arith.constant 0 : i32
    %c0_i32_0 = arith.constant 0 : i32
    %c0_i32_1 = arith.constant 0 : i32
    return %c0_i32, %c0_i32_0 : i32, i32
  }
  func.func @transform_4(%arg0: i32) -> (i32, i32) {
    %c0_i32 = arith.constant 0 : i32
    %c0_i32_0 = arith.constant 0 : i32
    %c0_i32_1 = arith.constant 0 : i32
    return %c0_i32, %c0_i32_0 : i32, i32
  }
  func.func @transform_5(%arg0: i32) -> (i32, i32) {
    %c0_i32 = arith.constant 0 : i32
    %c0_i32_0 = arith.constant 0 : i32
    %c0_i32_1 = arith.constant 0 : i32
    return %c0_i32, %c0_i32_0 : i32, i32
  }
  func.func @transform_6(%arg0: i32) -> (i32, i32) {
    %c0_i32 = arith.constant 0 : i32
    %c0_i32_0 = arith.constant 0 : i32
    return %arg0, %c0_i32 : i32, i32
  }
}

</mosaic_0001>

<bundles_post_ra>
// kernel: _lambda_.5
= control target key start
LH: loop header
LB: loop body
LE: loop exit
PB: predicated region body
PF: predicated region fallthrough
CT: control target
= control target key end

     0   :  { %s385_s12 = smov 0   ;;  %s415_s0 = inlined_call_operand.vmem [shape: bf16[128,128], index: 0, kind: input, shape index: {}]   ;;  %s416_s1 = inlined_call_operand.vmem [shape: f32[1,128], index: 1, kind: input, shape index: {}]   ;;  %s417_s2 = inlined_call_operand.vmem [shape: f32[1,128], index: 2, kind: input, shape index: {}]   ;;  %s418_s3 = inlined_call_operand.vmem [shape: bf16[128,128], index: 3, kind: output, shape index: {}]  }
   0x1 LB: > { %s294_s13 = sadd.s32 4294967295, %s363_s12   ;;  %p298_p0 = scmp.ge.s32.totalorder %s363_s12, 1  ;;  %s363_s12 = sphi %s385_s12, %s13_s12  }
   0x2   : > { %p138_p1 = scmp.lt.s32.totalorder %s363_s12, 3 }
   0x4   : > { %p139_p2 = pnand %p298_p0, %p138_p1 }
   0x5   : > { %s299_s14 = sshll.u32 (!%p139_p2), %s294_s13, 3 }
   0x6   : > { %142 = sbr.rel (%p139_p2) target bundleno = 29 (0x1d), region = 32  ;;  %p163_p3 = scmp.lt.s32.totalorder (!%p139_p2), %s299_s14, 15 }
   0xb   : > { %s420_s14 = smov (!%p163_p3, %s299_s14), 15  ;;  %v355_v0 = vld [vmem:[%s416_s1] ss:$0 sm:$0xff] }
   0xc   : > { %s300_s15 = sshll.u32 %s420_s14, 2  ;;  %v356_v6 = vld [vmem:[%s417_s2] ss:$0 sm:$0xff] }
   0xd   : > { %s166_s18 = scalar_lea.vmem %s415_s0, %s300_s15  ;;  %s172_s25 = scalar_lea.vmem %s418_s3, %s300_s15 }
   0xe   : > { %v306_v1 = vld [vmem:[%s166_s18] sm:$0xff]   ;;  %v341_v2 = vld [vmem:[%s166_s18 + $0x8] sm:$0xff]   ;;  %v342_v3 = vld [vmem:[%s166_s18 + $0x10] sm:$0xff]  }
   0xf   : > { %v307_v4 = vunpack.c.l.bf16 %v306_v1  ;;  %v308_v5 = vunpack.c.h.bf16 %v306_v1  ;;  %v311_v7 = vunpack.c.l.bf16 %v341_v2  ;;  %v312_v8 = vunpack.c.h.bf16 %v341_v2  ;;  %v343_v9 = vld [vmem:[%s166_s18 + $0x18] sm:$0xff]  }
  0x10   : > { %v315_v10 = vunpack.c.l.bf16 %v342_v3  ;;  %v316_v11 = vunpack.c.h.bf16 %v342_v3  ;;  %v319_v12 = vunpack.c.l.bf16 %v343_v9  ;;  %v320_v13 = vunpack.c.h.bf16 %v343_v9 }
  0x11   : > { %v194_v14 = vmul.f32 %v355_v0, %v307_v4  ;;  %v195_v15 = vmul.f32 %v355_v0, %v308_v5  ;;  %v196_v16 = vmul.f32 %v355_v0, %v311_v7  ;;  %v197_v17 = vmul.f32 %v355_v0, %v312_v8 }
  0x12   : > { %v198_v18 = vmul.f32 %v355_v0, %v315_v10  ;;  %v199_v19 = vmul.f32 %v355_v0, %v316_v11  ;;  %v200_v20 = vmul.f32 %v355_v0, %v319_v12  ;;  %v201_v21 = vmul.f32 %v355_v0, %v320_v13 }
  0x13   : > { %v206_v22 = vadd.f32 %v356_v6, %v194_v14  ;;  %v207_v23 = vadd.f32 %v356_v6, %v195_v15  ;;  %v208_v24 = vadd.f32 %v356_v6, %v196_v16  ;;  %v209_v25 = vadd.f32 %v356_v6, %v197_v17 }
  0x14   : > { %v210_v26 = vadd.f32 %v356_v6, %v198_v18  ;;  %v211_v27 = vadd.f32 %v356_v6, %v199_v19  ;;  %v212_v28 = vadd.f32 %v356_v6, %v200_v20  ;;  %v213_v29 = vadd.f32 %v356_v6, %v201_v21 }
  0x15   : > { %v214_v30 = vmax.f32 %v206_v22, 0.0  ;;  %v215_v31 = vmax.f32 %v207_v23, 0.0  ;;  %v216_v32 = vmax.f32 %v208_v24, 0.0  ;;  %v217_v33 = vmax.f32 %v209_v25, 0.0 }
  0x16   : > { %v218_v34 = vmax.f32 %v210_v26, 0.0  ;;  %v219_v35 = vmax.f32 %v211_v27, 0.0  ;;  %v220_v36 = vmax.f32 %v212_v28, 0.0  ;;  %v221_v37 = vmax.f32 %v213_v29, 0.0 }
  0x17   : > { %v324_v38 = vpack.c.bf16 %v215_v31, %v214_v30  ;;  %v329_v39 = vpack.c.bf16 %v217_v33, %v216_v32 }
  0x18   : > { %v334_v40 = vpack.c.bf16 %v219_v35, %v218_v34  ;;  %v339_v41 = vpack.c.bf16 %v221_v37, %v220_v36 }
  0x19   : > { %325 = vst [vmem:[%s172_s25] sm:$0xff] %v324_v38  }
  0x1a   : > { %344 = vst [vmem:[%s172_s25 + $0x8] sm:$0xff] %v329_v39  }
  0x1b   : > { %345 = vst [vmem:[%s172_s25 + $0x10] sm:$0xff] %v334_v40  }
  0x1c   : > { %346 = vst [vmem:[%s172_s25 + $0x18] sm:$0xff] %v339_v41  }
  0x1d PF: > { %s13_s12 = sadd.s32 1, %s363_s12  }
  0x1e   : > { %p10_p4 = scmp.ge.s32.totalorder %s13_s12, 4  }
  0x20   :  { %12 = sbr.rel (!%p10_p4) target bundleno = 1 (0x1), region = 62 }

// kernel: _lambda_.4
= control target key start
LH: loop header
LB: loop body
LE: loop exit
PB: predicated region body
PF: predicated region fallthrough
CT: control target
= control target key end

     0   :  { %s1180_s15 = smov 0   ;;  %s1542_s0 = inlined_call_operand.vmem [shape: bf16[128,256], index: 0, kind: input, shape index: {}]   ;;  %s1543_s1 = inlined_call_operand.vmem [shape: bf16[256,256], index: 1, kind: input, shape index: {}]   ;;  %s1544_s2 = inlined_call_operand.vmem [shape: bf16[128,128], index: 2, kind: output, shape index: {0}]   ;;  %s1545_s3 = inlined_call_operand.vmem [shape: bf16[128,128], index: 3, kind: output, shape index: {1}]   ;;  %s1546_s4 = inlined_call_operand.vmem [shape: f32[2,4,128], index: 4, kind: output, shape index: {2}]  }
   0x1 LB: > { %s1186_s16 = sadd.s32 4294967295, %s1153_s15   ;;  %p878_p0 = scmp.ge.s32.totalorder %s1153_s15, 1  ;;  %s1153_s15 = sphi %s1180_s15, %s15_s15  }
   0x2   : > { %p169_p1 = scmp.lt.s32.totalorder %s1153_s15, 3 }
   0x4   : > { %p170_p2 = pnand %p878_p0, %p169_p1 }
   0x5   : > { %s879_s29 = sshll.u32 (!%p170_p2), %s1186_s16, 3  ;;  %s1047_s11 = sshll.u32 (!%p170_p2), %s1186_s16, 6 }
   0x6   : > { %173 = sbr.rel (%p170_p2) target bundleno = 291 (0x123), region = 28  ;;  %p206_p3 = scmp.lt.s32.totalorder (!%p170_p2), %s879_s29, 15 }
   0x7   : > { %s617_s12 = ssub.s32 (!%p170_p2), 128, %s1047_s11  ;;  %p224_p5 = scmp.lt.s32.totalorder (!%p170_p2), %s1186_s16, 1 }
   0x8   : > { %p618_p4 = scmp.lt.s32.totalorder (!%p170_p2), %s617_s12, 64 }
   0xb   : > { %v977_v0 = vld [vmem:[%s1543_s1 + $0x70] sm:$0xf]  ;;  %v1074_v1 = vld [vmem:[%s1543_s1 + $0x74] sm:$0xf0]  ;;  %v1073_v5 = vld [vmem:[%s1543_s1 + $0x74] sm:$0xf] }
   0xc   : > { %v1041_v2 = vld [vmem:[%s1543_s1 + $0xf0] sm:$0xf]  ;;  %v978_v3 = vor.u32 %v1074_v1, %v977_v0  ;;  %v1090_v4 = vld [vmem:[%s1543_s1 + $0xf4] sm:$0xf0]  ;;  %v979_v6 = vld [vmem:[%s1543_s1 + $0x78] sm:$0xf0] }
   0xd   : > { %v1042_v7 = vor.u32 %v1090_v4, %v1041_v2  ;;  %v982_v8 = vor.u32 %v1073_v5, %v979_v6  ;;  %v1089_v9 = vld [vmem:[%s1543_s1 + $0xf4] sm:$0xf]  ;;  %v1043_v10 = vld [vmem:[%s1543_s1 + $0xf8] sm:$0xf0]  ;;  %v969_v11 = vld [vmem:[%s1543_s1 + $0x60] sm:$0xf] }
   0xe   : > { %468 = vmatpush.bf16.msra.mxu0 %v978_v3  ;;  %v1046_v12 = vor.u32 %v1089_v9, %v1043_v10  ;;  %v1072_v13 = vld [vmem:[%s1543_s1 + $0x64] sm:$0xf0]  ;;  %v1033_v14 = vld [vmem:[%s1543_s1 + $0xe0] sm:$0xf]  ;;  %v1071_v18 = vld [vmem:[%s1543_s1 + $0x64] sm:$0xf] }
   0xf   : > { %v1088_v15 = vld [vmem:[%s1543_s1 + $0xe4] sm:$0xf0]  ;;  %497 = vmatpush.bf16.msra.mxu1 %v1042_v7  ;;  %526 = vmatpush.bf16.msra.mxu2 %v982_v8  ;;  %v970_v16 = vor.u32 %v1072_v13, %v969_v11  ;;  %v971_v19 = vld [vmem:[%s1543_s1 + $0x68] sm:$0xf0]  ;;  %v1087_v20 = vld [vmem:[%s1543_s1 + $0xe4] sm:$0xf] }
  0x10   : > { %v1034_v17 = vor.u32 %v1088_v15, %v1033_v14  ;;  %555 = vmatpush.bf16.msra.mxu3 %v1046_v12  ;;  %v974_v21 = vor.u32 %v1071_v18, %v971_v19  ;;  %v1035_v22 = vld [vmem:[%s1543_s1 + $0xe8] sm:$0xf0]  ;;  %v961_v23 = vld [vmem:[%s1543_s1 + $0x50] sm:$0xf]  ;;  %v1070_v24 = vld [vmem:[%s1543_s1 + $0x54] sm:$0xf0] }
  0x11   : > { %v1038_v25 = vor.u32 %v1087_v20, %v1035_v22  ;;  %v1025_v26 = vld [vmem:[%s1543_s1 + $0xd0] sm:$0xf]  ;;  %v1086_v27 = vld [vmem:[%s1543_s1 + $0xd4] sm:$0xf0]  ;;  %v1069_v28 = vld [vmem:[%s1543_s1 + $0x54] sm:$0xf]  ;;  %v962_v29 = vor.u32 %v1070_v24, %v961_v23 }
  0x12   : > { %469 = vmatpush.bf16.msra.mxu0 %v970_v16  ;;  %v963_v30 = vld [vmem:[%s1543_s1 + $0x58] sm:$0xf0]  ;;  %v1085_v31 = vld [vmem:[%s1543_s1 + $0xd4] sm:$0xf]  ;;  %v1026_v33 = vor.u32 %v1086_v27, %v1025_v26  ;;  %v953_v35 = vld [vmem:[%s1543_s1 + $0x40] sm:$0xf] }
  0x13   : > { %v1027_v32 = vld [vmem:[%s1543_s1 + $0xd8] sm:$0xf0]  ;;  %498 = vmatpush.bf16.msra.mxu1 %v1034_v17  ;;  %527 = vmatpush.bf16.msra.mxu2 %v974_v21  ;;  %v966_v34 = vor.u32 %v1069_v28, %v963_v30  ;;  %v1068_v36 = vld [vmem:[%s1543_s1 + $0x44] sm:$0xf0]  ;;  %v1017_v37 = vld [vmem:[%s1543_s1 + $0xc0] sm:$0xf] }
  0x14   : > { %556 = vmatpush.bf16.msra.mxu3 %v1038_v25  ;;  %v1030_v38 = vor.u32 %v1085_v31, %v1027_v32  ;;  %v1084_v39 = vld [vmem:[%s1543_s1 + $0xc4] sm:$0xf0]  ;;  %v1067_v40 = vld [vmem:[%s1543_s1 + $0x44] sm:$0xf]  ;;  %v955_v41 = vld [vmem:[%s1543_s1 + $0x48] sm:$0xf0]  ;;  %v954_v44 = vor.u32 %v1068_v36, %v953_v35 }
  0x15   : > { %v1083_v42 = vld [vmem:[%s1543_s1 + $0xc4] sm:$0xf]  ;;  %v1019_v43 = vld [vmem:[%s1543_s1 + $0xc8] sm:$0xf0]  ;;  %v1018_v45 = vor.u32 %v1084_v39, %v1017_v37  ;;  %v958_v46 = vor.u32 %v1067_v40, %v955_v41  ;;  %v945_v47 = vld [vmem:[%s1543_s1 + $0x30] sm:$0xf] }
  0x16   : > { %470 = vmatpush.bf16.msra.mxu0 %v962_v29  ;;  %v1066_v48 = vld [vmem:[%s1543_s1 + $0x34] sm:$0xf0]  ;;  %v1009_v49 = vld [vmem:[%s1543_s1 + $0xb0] sm:$0xf]  ;;  %v1022_v50 = vor.u32 %v1083_v42, %v1019_v43  ;;  %v1065_v52 = vld [vmem:[%s1543_s1 + $0x34] sm:$0xf] }
  0x17   : > { %499 = vmatpush.bf16.msra.mxu1 %v1026_v33  ;;  %528 = vmatpush.bf16.msra.mxu2 %v966_v34  ;;  %v1082_v51 = vld [vmem:[%s1543_s1 + $0xb4] sm:$0xf0]  ;;  %v947_v53 = vld [vmem:[%s1543_s1 + $0x38] sm:$0xf0]  ;;  %v1081_v54 = vld [vmem:[%s1543_s1 + $0xb4] sm:$0xf]  ;;  %v946_v56 = vor.u32 %v1066_v48, %v945_v47 }
  0x18   : > { %557 = vmatpush.bf16.msra.mxu3 %v1030_v38  ;;  %v1011_v55 = vld [vmem:[%s1543_s1 + $0xb8] sm:$0xf0]  ;;  %v1010_v57 = vor.u32 %v1082_v51, %v1009_v49  ;;  %v950_v58 = vor.u32 %v1065_v52, %v947_v53  ;;  %v937_v59 = vld [vmem:[%s1543_s1 + $0x20] sm:$0xf]  ;;  %v1064_v60 = vld [vmem:[%s1543_s1 + $0x24] sm:$0xf0] }
  0x19   : > { %v1001_v61 = vld [vmem:[%s1543_s1 + $0xa0] sm:$0xf]  ;;  %v1014_v62 = vor.u32 %v1081_v54, %v1011_v55  ;;  %v1080_v63 = vld [vmem:[%s1543_s1 + $0xa4] sm:$0xf0]  ;;  %v1063_v0 = vld [vmem:[%s1543_s1 + $0x24] sm:$0xf]  ;;  %v938_v4 = vor.u32 %v1064_v60, %v937_v59 }
  0x1a   : > { %471 = vmatpush.bf16.msra.mxu0 %v954_v44  ;;  %v939_v1 = vld [vmem:[%s1543_s1 + $0x28] sm:$0xf0]  ;;  %v1079_v2 = vld [vmem:[%s1543_s1 + $0xa4] sm:$0xf]  ;;  %v929_v5 = vld [vmem:[%s1543_s1 + $0x10] sm:$0xf]  ;;  %v1002_v6 = vor.u32 %v1080_v63, %v1001_v61 }
  0x1b   : > { %500 = vmatpush.bf16.msra.mxu1 %v1018_v45  ;;  %529 = vmatpush.bf16.msra.mxu2 %v958_v46  ;;  %v1003_v3 = vld [vmem:[%s1543_s1 + $0xa8] sm:$0xf0]  ;;  %v942_v7 = vor.u32 %v1063_v0, %v939_v1  ;;  %v1062_v8 = vld [vmem:[%s1543_s1 + $0x14] sm:$0xf0]  ;;  %v993_v9 = vld [vmem:[%s1543_s1 + $0x90] sm:$0xf] }
  0x1c   : > { %558 = vmatpush.bf16.msra.mxu3 %v1022_v50  ;;  %v1078_v10 = vld [vmem:[%s1543_s1 + $0x94] sm:$0xf0]  ;;  %v1006_v11 = vor.u32 %v1079_v2, %v1003_v3  ;;  %v1061_v12 = vld [vmem:[%s1543_s1 + $0x14] sm:$0xf]  ;;  %v931_v13 = vld [vmem:[%s1543_s1 + $0x18] sm:$0xf0]  ;;  %v930_v16 = vor.u32 %v1062_v8, %v929_v5 }
  0x1d   : > { %v1077_v14 = vld [vmem:[%s1543_s1 + $0x94] sm:$0xf]  ;;  %v995_v15 = vld [vmem:[%s1543_s1 + $0x98] sm:$0xf0]  ;;  %v921_v17 = vld [vmem:[%s1543_s1] sm:$0xf]  ;;  %v994_v18 = vor.u32 %v1078_v10, %v993_v9  ;;  %v934_v19 = vor.u32 %v1061_v12, %v931_v13 }
  0x1e   : > { %472 = vmatpush.bf16.msra.mxu0 %v946_v56  ;;  %v1060_v20 = vld [vmem:[%s1543_s1 + $0x4] sm:$0xf0]  ;;  %v985_v21 = vld [vmem:[%s1543_s1 + $0x80] sm:$0xf]  ;;  %s1548_s29 = smov (!%p206_p3, %s879_s29), 15  ;;  %v998_v22 = vor.u32 %v1077_v14, %v995_v15  ;;  %s1550_s12 = smov (!%p618_p4, %s617_s12), 64 }
  0x1f   : > { %501 = vmatpush.bf16.msra.mxu1 %v1010_v57  ;;  %530 = vmatpush.bf16.msra.mxu2 %v950_v58  ;;  %v1076_v23 = vld [vmem:[%s1543_s1 + $0x84] sm:$0xf0]  ;;  %v1059_v24 = vld [vmem:[%s1543_s1 + $0x4] sm:$0xf]  ;;  %v923_v25 = vld [vmem:[%s1543_s1 + $0x8] sm:$0xf0]  ;;  %v922_v28 = vor.u32 %v1060_v20, %v921_v17  ;;  %s620_s13 = scvt.s32.f32 %s1550_s12 }
  0x20   : > { %559 = vmatpush.bf16.msra.mxu3 %v1014_v62  ;;  %v1075_v26 = vld [vmem:[%s1543_s1 + $0x84] sm:$0xf]  ;;  %v987_v27 = vld [vmem:[%s1543_s1 + $0x88] sm:$0xf0]  ;;  %s1050_s26 = sshll.u32 %s1548_s29, 3  ;;  %v986_v29 = vor.u32 %v1076_v23, %v985_v21  ;;  %v926_v30 = vor.u32 %v1059_v24, %v923_v25  ;;  %s883_s5 = sshll.u32 %s1548_s29, 2 }
  0x21   : > { %s1389_s30 = scalar_lea.vmem %s1542_s0, %s1050_s26  ;;  %v990_v34 = vor.u32 %v1075_v26, %v987_v27  ;;  %s1411_s8 = scalar_lea.vmem %s1544_s2, %s883_s5  ;;  %vm746_vm4 = vcmask 1040384   ;;  %vm748_vm5 = vcmask 1041408   ;;  %vm750_vm6 = vcmask 1042432  }
  0x22   : > { %473 = vmatpush.bf16.msra.mxu0 %v938_v4  ;;  %v889_v31 = vld [vmem:[%s1389_s30] sm:$0xf]  ;;  %v1052_v32 = vld [vmem:[%s1389_s30 + $0x4] sm:$0xf0]  ;;  %v1051_v33 = vld [vmem:[%s1389_s30 + $0x4] sm:$0xf]  ;;  %s1421_s10 = scalar_lea.vmem %s1545_s3, %s883_s5 }
  0x23   : > { %502 = vmatpush.bf16.msra.mxu1 %v1002_v6  ;;  %531 = vmatpush.bf16.msra.mxu2 %v942_v7  ;;  %v891_v35 = vld [vmem:[%s1389_s30 + $0x8] sm:$0xf0]  ;;  %v890_v36 = vor.u32 %v1052_v32, %v889_v31  ;;  %v897_v38 = vld [vmem:[%s1389_s30 + $0x10] sm:$0xf]  ;;  %v1054_v39 = vld [vmem:[%s1389_s30 + $0x14] sm:$0xf0] }
  0x24   : > { %560 = vmatpush.bf16.msra.mxu3 %v1006_v11  ;;  %v894_v37 = vor.u32 %v1051_v33, %v891_v35  ;;  %v1053_v40 = vld [vmem:[%s1389_s30 + $0x14] sm:$0xf]  ;;  %v899_v41 = vld [vmem:[%s1389_s30 + $0x18] sm:$0xf0]  ;;  %v898_v42 = vor.u32 %v1054_v39, %v897_v38  ;;  %v905_v44 = vld [vmem:[%s1389_s30 + $0x20] sm:$0xf] }
  0x25   : > { %v902_v43 = vor.u32 %v1053_v40, %v899_v41  ;;  %v1056_v45 = vld [vmem:[%s1389_s30 + $0x24] sm:$0xf0]  ;;  %v1055_v46 = vld [vmem:[%s1389_s30 + $0x24] sm:$0xf]  ;;  %v907_v47 = vld [vmem:[%s1389_s30 + $0x28] sm:$0xf0] }
  0x26   : > { %474 = vmatpush.bf16.msra.mxu0 %v930_v16  ;;  %v906_v48 = vor.u32 %v1056_v45, %v905_v44  ;;  %v910_v49 = vor.u32 %v1055_v46, %v907_v47  ;;  %v913_v50 = vld [vmem:[%s1389_s30 + $0x30] sm:$0xf]  ;;  %v1058_v51 = vld [vmem:[%s1389_s30 + $0x34] sm:$0xf0]  ;;  %v1057_v52 = vld [vmem:[%s1389_s30 + $0x34] sm:$0xf] }
  0x27   : > { %503 = vmatpush.bf16.msra.mxu1 %v994_v18  ;;  %532 = vmatpush.bf16.msra.mxu2 %v934_v19  ;;  %v915_v53 = vld [vmem:[%s1389_s30 + $0x38] sm:$0xf0]  ;;  %v914_v54 = vor.u32 %v1058_v51, %v913_v50  ;;  %s621_s14 = ssub.f32 64.0, %s620_s13  ;;  %s1552_s16 = smov (!%p224_p5, %s1186_s16), 1 }
  0x28   : > { %561 = vmatpush.bf16.msra.mxu3 %v998_v22  ;;  %v918_v55 = vor.u32 %v1057_v52, %v915_v53  ;;  %s886_s17 = sshll.u32 %s1552_s16, 2 }
  0x29   : > { %s227_s20 = scalar_lea.vmem %s1546_s4, %s886_s17 }
  0x2a   : > { %475 = vmatpush.bf16.msra.mxu0 %v922_v28 }
  0x2b   : > { %504 = vmatpush.bf16.msra.mxu1 %v986_v29  ;;  %533 = vmatpush.bf16.msra.mxu2 %v926_v30  ;;  %v1434_v30 = vstv %s620_s13 }
  0x2c   : > { %562 = vmatpush.bf16.msra.mxu3 %v990_v34  ;;  %1145 = vrcp.f32 %v1434_v30  ;;  %vm649_vm0 = vweird.f32 %v1434_v30 }
  0x2d   : > { %476 = vmatmul.bf16.vlgmr.msra.gmra.mxu0 %v890_v36 }
  0x2e   : > { %505 = vmatmul.bf16.vlgmr.msra.gmra.mxu1 %v894_v37  ;;  %534 = vmatmul.bf16.vlgmr.msra.gmra.mxu2 %v890_v36 }
  0x2f   : > { %563 = vmatmul.bf16.vlgmr.msra.gmra.mxu3 %v894_v37 }
  0x32   : > { %v1450_v50 = vpop.eup %1145 }
  0x33   : > { %vm650_vm1 = vweird.f32 %v1450_v50 }
  0x34   : > { %vm651_vm2 = vmor %vm649_vm0, %vm650_vm1 }
  0x3d   : > { %481 = vmatmul.bf16.gmra.mxu0 %v898_v42 }
  0x3e   : > { %510 = vmatmul.bf16.gmra.mxu1 %v902_v43  ;;  %539 = vmatmul.bf16.gmra.mxu2 %v898_v42 }
  0x3f   : > { %568 = vmatmul.bf16.gmra.mxu3 %v902_v43 }
  0x4d   : > { %486 = vmatmul.bf16.gmra.mxu0 %v906_v48 }
  0x4e   : > { %515 = vmatmul.bf16.gmra.mxu1 %v910_v49  ;;  %544 = vmatmul.bf16.gmra.mxu2 %v906_v48 }
  0x4f   : > { %573 = vmatmul.bf16.gmra.mxu3 %v910_v49 }
  0x5d   : > { %491 = vmatmul.bf16.gmra.mxu0 %v914_v54 }
  0x5e   : > { %520 = vmatmul.bf16.gmra.mxu1 %v918_v55  ;;  %549 = vmatmul.bf16.gmra.mxu2 %v914_v54 }
  0x5f   : > { %578 = vmatmul.bf16.gmra.mxu3 %v918_v55 }
  0xaa   : > { %v477_v56 = vpop.f32.mrf.mxu0 }
  0xab   : > { %v506_v57 = vpop.f32.mrf.mxu1 }
  0xac   : > { %v507_v62 = vadd.f32 %v506_v57, %v477_v56 }
  0xae   : > { %v584_v31 = vpack.c.bf16 %v507_v62, %v507_v62 }
  0xb0   : > { %v1440_v41 = vunpack.c.l.bf16 %v584_v31 }
  0xb1   : > { %v535_v58 = vpop.f32.mrf.mxu2 }
  0xb2   : > { %v564_v59 = vpop.f32.mrf.mxu3  ;;  %v479_v60 = vpop.f32.mrf.mxu0 }
  0xb3   : > { %v508_v61 = vpop.f32.mrf.mxu1  ;;  %v1414_v4 = vadd.f32 %v564_v59, %v535_v58 }
  0xb4   : > { %v509_v63 = vadd.f32 %v508_v61, %v479_v60 }
  0xb5   : > { %v592_v51 = vpack.c.bf16 %v1414_v4, %v1414_v4 }
  0xb6   : > { %v1094_v0 = vpack.c.bf16 %v509_v63, %v507_v62  ;;  %v585_v28 = vpack.c.bf16 %v509_v63, %v509_v63  ;;  %v645_v63 = vmul.f32 %v1450_v50, %v1434_v30 }
  0xb8   : > { %1095 = vst [vmem:[%s1411_s8] sm:$0xff] %v1094_v0   ;;  %v1438_v34 = vunpack.c.l.bf16 %v585_v28  ;;  %v1465_v0 = vunpack.c.l.bf16 %v592_v51 }
  0xb9   : > { %v537_v1 = vpop.f32.mrf.mxu2 }
  0xba   : > { %v566_v2 = vpop.f32.mrf.mxu3  ;;  %v482_v3 = vpop.f32.mrf.mxu0  ;;  %v630_v47 = vadd.f32 %v1438_v34, %v1440_v41 }
  0xbb   : > { %v1416_v5 = vadd.f32 %v566_v2, %v537_v1  ;;  %v511_v6 = vpop.f32.mrf.mxu1 }
  0xbc   : > { %v512_v12 = vadd.f32 %v511_v6, %v482_v3 }
  0xbd   : > { %v1114_v7 = vpack.c.bf16 %v1416_v5, %v1414_v4  ;;  %v593_v45 = vpack.c.bf16 %v1416_v5, %v1416_v5 }
  0xbe   : > { %v586_v32 = vpack.c.bf16 %v512_v12, %v512_v12 }
  0xbf   : > { %1115 = vst [vmem:[%s1421_s10] sm:$0xff] %v1114_v7   ;;  %v1458_v56 = vunpack.c.l.bf16 %v593_v45 }
  0xc0   : > { %v1442_v42 = vunpack.c.l.bf16 %v586_v32  ;;  %v655_v32 = vand.u32 2147483648, %v1434_v30 }
  0xc1   : > { %v540_v8 = vpop.f32.mrf.mxu2 }
  0xc2   : > { %v569_v9 = vpop.f32.mrf.mxu3  ;;  %v484_v10 = vpop.f32.mrf.mxu0  ;;  %v631_v53 = vadd.f32 %v630_v47, %v1442_v42 }
  0xc3   : > { %v513_v11 = vpop.f32.mrf.mxu1  ;;  %v570_v18 = vadd.f32 %v569_v9, %v540_v8  ;;  %v700_v8 = vadd.f32 %v1458_v56, %v1465_v0 }
  0xc4   : > { %v514_v13 = vadd.f32 %v513_v11, %v484_v10 }
  0xc5   : > { %v594_v52 = vpack.c.bf16 %v570_v18, %v570_v18 }
  0xc6   : > { %v1099_v14 = vpack.c.bf16 %v514_v13, %v512_v12  ;;  %v587_v35 = vpack.c.bf16 %v514_v13, %v514_v13 }
  0xc7   : > { %v1467_v1 = vunpack.c.l.bf16 %v594_v52 }
  0xc8   : > { %1131 = vst [vmem:[%s1411_s8 + $0x8] sm:$0xff] %v1099_v14   ;;  %v1448_v48 = vunpack.c.l.bf16 %v587_v35  ;;  %v646_v14 = vsub.f32 1.0, %v645_v63 }
  0xc9   : > { %v542_v15 = vpop.f32.mrf.mxu2 }
  0xca   : > { %v571_v16 = vpop.f32.mrf.mxu3  ;;  %v487_v17 = vpop.f32.mrf.mxu0  ;;  %v632_v59 = vadd.f32 %v631_v53, %v1448_v48 }
  0xcb   : > { %v572_v19 = vadd.f32 %v571_v16, %v542_v15  ;;  %v516_v20 = vpop.f32.mrf.mxu1  ;;  %v701_v15 = vadd.f32 %v700_v8, %v1467_v1 }
  0xcc   : > { %v517_v26 = vadd.f32 %v516_v20, %v487_v17 }
  0xcd   : > { %v1119_v21 = vpack.c.bf16 %v572_v19, %v570_v18  ;;  %v595_v57 = vpack.c.bf16 %v572_v19, %v572_v19 }
  0xce   : > { %v588_v43 = vpack.c.bf16 %v517_v26, %v517_v26 }
  0xcf   : > { %1134 = vst [vmem:[%s1421_s10 + $0x8] sm:$0xff] %v1119_v21   ;;  %v1474_v9 = vunpack.c.l.bf16 %v595_v57 }
  0xd0   : > { %v1456_v54 = vunpack.c.l.bf16 %v588_v43 }
  0xd1   : > { %v545_v22 = vpop.f32.mrf.mxu2  ;;  %v702_v20 = vadd.f32 %v701_v15, %v1474_v9 }
  0xd2   : > { %v574_v23 = vpop.f32.mrf.mxu3  ;;  %v489_v24 = vpop.f32.mrf.mxu0  ;;  %v633_v5 = vadd.f32 %v632_v59, %v1456_v54 }
  0xd3   : > { %v518_v25 = vpop.f32.mrf.mxu1  ;;  %v575_v38 = vadd.f32 %v574_v23, %v545_v22 }
  0xd4   : > { %v519_v27 = vadd.f32 %v518_v25, %v489_v24  ;;  %v647_v24 = vmul.f32 %v1450_v50, %v646_v14 }
  0xd5   : > { %v596_v2 = vpack.c.bf16 %v575_v38, %v575_v38 }
  0xd6   : > { %v1104_v29 = vpack.c.bf16 %v519_v27, %v517_v26  ;;  %v589_v49 = vpack.c.bf16 %v519_v27, %v519_v27 }
  0xd7   : > { %v1478_v16 = vunpack.c.l.bf16 %v596_v2 }
  0xd8   : > { %1132 = vst [vmem:[%s1411_s8 + $0x10] sm:$0xff] %v1104_v29   ;;  %v1461_v60 = vunpack.c.l.bf16 %v589_v49 }
  0xd9   : > { %v547_v33 = vpop.f32.mrf.mxu2  ;;  %v703_v26 = vadd.f32 %v702_v20, %v1478_v16 }
  0xda   : > { %v576_v36 = vpop.f32.mrf.mxu3  ;;  %v492_v37 = vpop.f32.mrf.mxu0  ;;  %v634_v11 = vadd.f32 %v633_v5, %v1461_v60 }
  0xdb   : > { %v577_v39 = vadd.f32 %v576_v36, %v547_v33  ;;  %v521_v40 = vpop.f32.mrf.mxu1 }
  0xdc   : > { %v522_v44 = vadd.f32 %v521_v40, %v492_v37  ;;  %v648_v37 = vadd.f32 %v1450_v50, %v647_v24 }
  0xdd   : > { %v1124_v46 = vpack.c.bf16 %v577_v39, %v575_v38  ;;  %v597_v10 = vpack.c.bf16 %v577_v39, %v577_v39  ;;  %v653_v38 = vand.u32 2147483647, %v1434_v30 }
  0xde   : > { %v590_v55 = vpack.c.bf16 %v522_v44, %v522_v44  ;;  %v652_v47 = vsel %vm651_vm2, %v1450_v50, %v648_v37 }
  0xdf   : > { %1135 = vst [vmem:[%s1421_s10 + $0x10] sm:$0xff] %v1124_v46   ;;  %v1483_v21 = vunpack.c.l.bf16 %v597_v10  ;;  %vm654_vm3 = vcmp.eq.f32.partialorder %v653_v38, 8.507059e+37 }
  0xe0   : > { %v1470_v6 = vunpack.c.l.bf16 %v590_v55 }
  0xe1   : > { %v550_v58 = vpop.f32.mrf.mxu2  ;;  %v704_v31 = vadd.f32 %v703_v26, %v1483_v21 }
  0xe2   : > { %v579_v61 = vpop.f32.mrf.mxu3  ;;  %v494_v62 = vpop.f32.mrf.mxu0  ;;  %v635_v18 = vadd.f32 %v634_v11, %v1470_v6 }
  0xe3   : > { %v580_v3 = vadd.f32 %v579_v61, %v550_v58  ;;  %v523_v4 = vpop.f32.mrf.mxu1 }
  0xe4   : > { %v524_v7 = vadd.f32 %v523_v4, %v494_v62 }
  0xe5   : > { %v598_v17 = vpack.c.bf16 %v580_v3, %v580_v3 }
  0xe6   : > { %v591_v12 = vpack.c.bf16 %v524_v7, %v524_v7  ;;  %v1109_v13 = vpack.c.bf16 %v524_v7, %v522_v44  ;;  %v656_v44 = vor.u32 1.1754944e-38, %v655_v32 }
  0xe7   : > { %v1487_v27 = vunpack.c.l.bf16 %v598_v17 }
  0xe8   : > { %1133 = vst [vmem:[%s1411_s8 + $0x18] sm:$0xff] %v1109_v13   ;;  %v629_v19 = vunpack.c.l.bf16 %v591_v12  ;;  %v657_v52 = vsel %vm654_vm3, %v656_v44, %v652_v47 }
  0xe9   : > { %v552_v22 = vpop.f32.mrf.mxu2  ;;  %v705_v39 = vadd.f32 %v704_v31, %v1487_v27 }
  0xea   : > { %v636_v23 = vadd.f32 %v635_v18, %v629_v19  ;;  %v581_v25 = vpop.f32.mrf.mxu3 }
  0xeb   : > { %v582_v28 = vadd.f32 %v581_v25, %v552_v22 }
  0xec   : > { %v637_v29 = vrot.slane %v636_v23, 4 }
  0xed   : > { %v599_v33 = vpack.c.bf16 %v582_v28, %v582_v28  ;;  %v1129_v35 = vpack.c.bf16 %v582_v28, %v580_v3 }
  0xee   : > { %v638_v36 = vadd.f32 %v637_v29, %v636_v23 }
  0xef   : > { %1136 = vst [vmem:[%s1421_s10 + $0x18] sm:$0xff] %v1129_v35   ;;  %v699_v40 = vunpack.c.l.bf16 %v599_v33 }
  0xf0   : > { %v639_v43 = vrot.slane %v638_v36, 2 }
  0xf1   : > { %v706_v45 = vadd.f32 %v705_v39, %v699_v40 }
  0xf2   : > { %v640_v46 = vadd.f32 %v639_v43, %v638_v36 }
  0xf3   : > { %v707_v49 = vrot.slane %v706_v45, 4 }
  0xf4   : > { %v641_v51 = vrot.slane %v640_v46, 1 }
  0xf5   : > { %v708_v53 = vadd.f32 %v707_v49, %v706_v45 }
  0xf6   : > { %v1498_v55 = vadd.f32 %v641_v51, %v640_v46  ;;  %v688_v46 = vstv %s621_s14 }
  0xf7   : > { %v709_v57 = vrot.slane %v708_v53, 2 }
  0xf8   : > { %v1501_v30 = vmul.f32 %v657_v52, %v1498_v55 }
  0xf9   : > { %v710_v61 = vadd.f32 %v709_v57, %v708_v53 }
  0xfa   : > { %v659_v58 = vsub.f32 %v1440_v41, %v1501_v30  ;;  %v660_v59 = vsub.f32 %v1438_v34, %v1501_v30  ;;  %v661_v50 = vsub.f32 %v1442_v42, %v1501_v30  ;;  %v662_v62 = vsub.f32 %v1448_v48, %v1501_v30 }
  0xfb   : > { %v663_v3 = vsub.f32 %v1456_v54, %v1501_v30  ;;  %v711_v7 = vrot.slane %v710_v61, 1  ;;  %v664_v41 = vsub.f32 %v1461_v60, %v1501_v30  ;;  %v665_v42 = vsub.f32 %v1470_v6, %v1501_v30 }
  0xfc   : > { %v667_v63 = vmul.f32 %v659_v58, %v659_v58  ;;  %v668_v2 = vmul.f32 %v660_v59, %v660_v59  ;;  %v669_v4 = vmul.f32 %v661_v50, %v661_v50  ;;  %v670_v8 = vmul.f32 %v662_v62, %v662_v62 }
  0xfd   : > { %v1515_v10 = vadd.f32 %v711_v7, %v710_v61  ;;  %v671_v11 = vmul.f32 %v663_v3, %v663_v3  ;;  %v666_v13 = vsub.f32 %v629_v19, %v1501_v30  ;;  %v672_v54 = vmul.f32 %v664_v41, %v664_v41 }
  0xfe   : > { %v675_v5 = vadd.f32 %v668_v2, %v667_v63  ;;  %v673_v18 = vmul.f32 %v665_v42, %v665_v42 }
  0xff   : > { %v713_v12 = vmul.f32 %v1515_v10, %v657_v52  ;;  %v674_v24 = vmul.f32 %v666_v13, %v666_v13 }
 0x100   : > { %v676_v34 = vadd.f32 %v675_v5, %v669_v4 }
 0x101   : > { %v714_v15 = vsub.f32 %v1465_v0, %v713_v12  ;;  %v715_v17 = vsub.f32 %v1458_v56, %v713_v12  ;;  %v716_v60 = vsub.f32 %v1467_v1, %v713_v12  ;;  %v717_v22 = vsub.f32 %v1474_v9, %v713_v12 }
 0x102   : > { %v677_v48 = vadd.f32 %v676_v34, %v670_v8  ;;  %v718_v26 = vsub.f32 %v1478_v16, %v713_v12  ;;  %v719_v0 = vsub.f32 %v1483_v21, %v713_v12  ;;  %v720_v1 = vsub.f32 %v1487_v27, %v713_v12 }
 0x103   : > { %v722_v23 = vmul.f32 %v714_v15, %v714_v15  ;;  %v723_v6 = vmul.f32 %v715_v17, %v715_v17  ;;  %v724_v19 = vmul.f32 %v716_v60, %v716_v60  ;;  %v725_v31 = vmul.f32 %v717_v22, %v717_v22 }
 0x104   : > { %v678_v14 = vadd.f32 %v677_v48, %v671_v11  ;;  %v726_v33 = vmul.f32 %v718_v26, %v718_v26  ;;  %v721_v36 = vsub.f32 %v699_v40, %v713_v12  ;;  %v727_v37 = vmul.f32 %v719_v0, %v719_v0 }
 0x105   : > { %v730_v28 = vadd.f32 %v723_v6, %v722_v23  ;;  %v728_v39 = vmul.f32 %v720_v1, %v720_v1  ;;  %v689_v27 = vmul.f32 %v688_v46, %v1501_v30  ;;  %v743_v50 = vmul.f32 %v713_v12, %v688_v46 }
 0x106   : > { %v679_v20 = vadd.f32 %v678_v14, %v672_v54  ;;  %v729_v21 = vmul.f32 %v721_v36, %v721_v36 }
 0x107   : > { %v731_v56 = vadd.f32 %v730_v28, %v724_v19  ;;  %v690_v53 = vmul.f32 %v689_v27, %v1501_v30  ;;  %v744_v2 = vmul.f32 %v743_v50, %v713_v12 }
 0x108   : > { %v680_v25 = vadd.f32 %v679_v20, %v673_v18 }
 0x109   : > { %v732_v35 = vadd.f32 %v731_v56, %v725_v31 }
 0x10a   : > { %v681_v29 = vadd.f32 %v680_v25, %v674_v24 }
 0x10b   : > { %v733_v38 = vadd.f32 %v732_v35, %v726_v33 }
 0x10c   : > { %v682_v32 = vrot.slane %v681_v29, 4 }
 0x10d   : > { %v734_v43 = vadd.f32 %v733_v38, %v727_v37 }
 0x10e   : > { %v683_v9 = vadd.f32 %v682_v32, %v681_v29 }
 0x10f   : > { %v735_v45 = vadd.f32 %v734_v43, %v728_v39 }
 0x110   : > { %v684_v16 = vrot.slane %v683_v9, 2 }
 0x111   : > { %v736_v49 = vadd.f32 %v735_v45, %v729_v21 }
 0x112   : > { %v685_v44 = vadd.f32 %v684_v16, %v683_v9 }
 0x113   : > { %v737_v51 = vrot.slane %v736_v49, 4 }
 0x114   : > { %v686_v47 = vrot.slane %v685_v44, 1 }
 0x115   : > { %v738_v40 = vadd.f32 %v737_v51, %v736_v49 }
 0x116   : > { %v687_v52 = vadd.f32 %v686_v47, %v685_v44 }
 0x117   : > { %v739_v57 = vrot.slane %v738_v40, 2 }
 0x118   : > { %v691_v58 = vsub.f32 %v687_v52, %v690_v53 }
 0x119   : > { %v740_v59 = vadd.f32 %v739_v57, %v738_v40 }
 0x11a   : > { %v747_v62 = vsel %vm746_vm4, %v1498_v55, %v691_v58 }
 0x11b   : > { %v741_v61 = vrot.slane %v740_v59, 1  ;;  %v749_v30 = vsel %vm748_vm5, %v747_v62, %v1515_v10 }
 0x11d   : > { %v742_v63 = vadd.f32 %v741_v61, %v740_v59 }
 0x11f   : > { %v745_v3 = vsub.f32 %v742_v63, %v744_v2 }
 0x121   : > { %v751_v4 = vsel %vm750_vm6, %v749_v30, %v745_v3 }
 0x122   : > { %752 = vst [vmem:[%s227_s20] sm:$0xf] %v751_v4 }
 0x123 PF: > { %s15_s15 = sadd.s32 1, %s1153_s15  }
 0x124   : > { %p12_p6 = scmp.ge.s32.totalorder %s15_s15, 4  }
 0x126   :  { %14 = sbr.rel (!%p12_p6) target bundleno = 1 (0x1), region = 82 }

// kernel: _lambda_.7
= control target key start
LH: loop header
LB: loop body
LE: loop exit
PB: predicated region body
PF: predicated region fallthrough
CT: control target
= control target key end

     0   :  { %s555_s21 = smov 0   ;;  %s653_s0 = inlined_call_operand.vmem [shape: bf16[128,128], index: 0, kind: input, shape index: {}]   ;;  %s654_s1 = inlined_call_operand.vmem [shape: bf16[128,128], index: 1, kind: input, shape index: {}]   ;;  %s655_s2 = inlined_call_operand.vmem [shape: f32[1,128], index: 2, kind: input, shape index: {}]   ;;  %s656_s3 = inlined_call_operand.vmem [shape: f32[1,128], index: 3, kind: input, shape index: {}]   ;;  %s657_s4 = inlined_call_operand.vmem [shape: f32[1,128], index: 4, kind: input, shape index: {}]   ;;  %s658_s5 = inlined_call_operand.vmem [shape: f32[1,128], index: 5, kind: input, shape index: {}]   ;;  %s659_s6 = inlined_call_operand.vmem [shape: f32[128,128], index: 6, kind: output, shape index: {}]  }
   0x1 LB: > { %s449_s22 = sadd.s32 4294967295, %s518_s21   ;;  %p453_p0 = scmp.ge.s32.totalorder %s518_s21, 1  ;;  %s518_s21 = sphi %s555_s21, %s16_s21  }
   0x2   : > { %p224_p1 = scmp.lt.s32.totalorder %s518_s21, 3 }
   0x4   : > { %p225_p2 = pnand %p453_p0, %p224_p1 }
   0x5   : > { %s454_s23 = sshll.u32 (!%p225_p2), %s449_s22, 3 }
   0x6   : > { %228 = sbr.rel (%p225_p2) target bundleno = 37 (0x25), region = 44  ;;  %p260_p3 = scmp.lt.s32.totalorder (!%p225_p2), %s454_s23, 15 }
   0xb   : > { %s661_s23 = smov (!%p260_p3, %s454_s23), 15  ;;  %v579_v0 = vld [vmem:[%s657_s4] ss:$0 sm:$0xff] }
   0xc   : > { %s455_s24 = sshll.u32 %s661_s23, 2  ;;  %v584_v1 = vld [vmem:[%s655_s2] ss:$0 sm:$0xff]  ;;  %s459_s15 = sshll.u32 %s661_s23, 3 }
   0xd   : > { %s569_s27 = scalar_lea.vmem %s653_s0, %s455_s24  ;;  %s574_s30 = scalar_lea.vmem %s654_s1, %s455_s24  ;;  %v592_v6 = vld [vmem:[%s658_s5] ss:$0 sm:$0xff] }
   0xe   : > { %v463_v2 = vld [vmem:[%s574_s30] sm:$0xff]   ;;  %v494_v4 = vld [vmem:[%s574_s30 + $0x8] sm:$0xff]   ;;  %v495_v24 = vld [vmem:[%s574_s30 + $0x10] sm:$0xff]   ;;  %s622_s18 = scalar_lea.vmem %s659_s6, %s459_s15 }
   0xf   : > { %v479_v3 = vld [vmem:[%s569_s27] sm:$0xff]   ;;  %v464_v5 = vunpack.c.l.bf16 %v463_v2  ;;  %v465_v9 = vunpack.c.h.bf16 %v463_v2  ;;  %v497_v11 = vld [vmem:[%s569_s27 + $0x8] sm:$0xff]   ;;  %v468_v12 = vunpack.c.l.bf16 %v494_v4  ;;  %v469_v14 = vunpack.c.h.bf16 %v494_v4  ;;  %v498_v25 = vld [vmem:[%s569_s27 + $0x10] sm:$0xff]  }
  0x10   : > { %v480_v7 = vunpack.c.l.bf16 %v479_v3  ;;  %v597_v8 = vld [vmem:[%s656_s3] ss:$0 sm:$0xff]  ;;  %v481_v10 = vunpack.c.h.bf16 %v479_v3  ;;  %v484_v13 = vunpack.c.l.bf16 %v497_v11  ;;  %v485_v15 = vunpack.c.h.bf16 %v497_v11  ;;  %v496_v42 = vld [vmem:[%s574_s30 + $0x18] sm:$0xff]  }
  0x11   : > { %v297_v16 = vmul.f32 %v579_v0, %v464_v5  ;;  %v298_v18 = vmul.f32 %v579_v0, %v465_v9  ;;  %v299_v20 = vmul.f32 %v579_v0, %v468_v12  ;;  %v300_v22 = vmul.f32 %v579_v0, %v469_v14  ;;  %v499_v43 = vld [vmem:[%s569_s27 + $0x18] sm:$0xff]  }
  0x12   : > { %v337_v17 = vmul.f32 %v584_v1, %v480_v7  ;;  %v338_v19 = vmul.f32 %v584_v1, %v481_v10  ;;  %v339_v21 = vmul.f32 %v584_v1, %v484_v13  ;;  %v340_v23 = vmul.f32 %v584_v1, %v485_v15 }
  0x13   : > { %v309_v26 = vadd.f32 %v592_v6, %v297_v16  ;;  %v310_v28 = vadd.f32 %v592_v6, %v298_v18  ;;  %v311_v30 = vadd.f32 %v592_v6, %v299_v20  ;;  %v312_v32 = vadd.f32 %v592_v6, %v300_v22 }
  0x14   : > { %v349_v27 = vadd.f32 %v597_v8, %v337_v17  ;;  %v350_v29 = vadd.f32 %v597_v8, %v338_v19  ;;  %v351_v31 = vadd.f32 %v597_v8, %v339_v21  ;;  %v352_v33 = vadd.f32 %v597_v8, %v340_v23 }
  0x15   : > { %v472_v36 = vunpack.c.l.bf16 %v495_v24  ;;  %v488_v37 = vunpack.c.l.bf16 %v498_v25  ;;  %v473_v40 = vunpack.c.h.bf16 %v495_v24  ;;  %v489_v41 = vunpack.c.h.bf16 %v498_v25 }
  0x16   : > { %v357_v34 = vmax.f32 %v349_v27, 0.0  ;;  %v358_v35 = vmax.f32 %v350_v29, 0.0  ;;  %v359_v38 = vmax.f32 %v351_v31, 0.0  ;;  %v360_v39 = vmax.f32 %v352_v33, 0.0 }
  0x17   : > { %v301_v46 = vmul.f32 %v579_v0, %v472_v36  ;;  %v341_v47 = vmul.f32 %v584_v1, %v488_v37  ;;  %v302_v50 = vmul.f32 %v579_v0, %v473_v40  ;;  %v342_v51 = vmul.f32 %v584_v1, %v489_v41 }
  0x18   : > { %v365_v44 = vadd.f32 %v357_v34, %v309_v26  ;;  %v366_v45 = vadd.f32 %v358_v35, %v310_v28  ;;  %v367_v48 = vadd.f32 %v359_v38, %v311_v30  ;;  %v368_v49 = vadd.f32 %v360_v39, %v312_v32 }
  0x19   : > { %v313_v52 = vadd.f32 %v592_v6, %v301_v46  ;;  %v353_v53 = vadd.f32 %v597_v8, %v341_v47  ;;  %v476_v54 = vunpack.c.l.bf16 %v496_v42  ;;  %v492_v55 = vunpack.c.l.bf16 %v499_v43 }
  0x1a   : > { %373 = vst [vmem:[%s622_s18] sm:$0xff] %v365_v44  ;;  %v314_v56 = vadd.f32 %v592_v6, %v302_v50  ;;  %v354_v57 = vadd.f32 %v597_v8, %v342_v51  ;;  %v477_v58 = vunpack.c.h.bf16 %v496_v42  ;;  %v493_v59 = vunpack.c.h.bf16 %v499_v43 }
  0x1b   : > { %374 = vst [vmem:[%s622_s18 + $0x8] sm:$0xff] %v366_v45  ;;  %v361_v60 = vmax.f32 %v353_v53, 0.0  ;;  %v303_v61 = vmul.f32 %v579_v0, %v476_v54  ;;  %v343_v62 = vmul.f32 %v584_v1, %v492_v55 }
  0x1c   : > { %375 = vst [vmem:[%s622_s18 + $0x10] sm:$0xff] %v367_v48  ;;  %v362_v63 = vmax.f32 %v354_v57, 0.0  ;;  %v304_v2 = vmul.f32 %v579_v0, %v477_v58  ;;  %v344_v3 = vmul.f32 %v584_v1, %v493_v59 }
  0x1d   : > { %376 = vst [vmem:[%s622_s18 + $0x18] sm:$0xff] %v368_v49  ;;  %v369_v4 = vadd.f32 %v361_v60, %v313_v52  ;;  %v315_v5 = vadd.f32 %v592_v6, %v303_v61  ;;  %v355_v7 = vadd.f32 %v597_v8, %v343_v62 }
  0x1e   : > { %v370_v9 = vadd.f32 %v362_v63, %v314_v56  ;;  %v316_v10 = vadd.f32 %v592_v6, %v304_v2  ;;  %v356_v11 = vadd.f32 %v597_v8, %v344_v3 }
  0x1f   : > { %377 = vst [vmem:[%s622_s18 + $0x20] sm:$0xff] %v369_v4  ;;  %v363_v12 = vmax.f32 %v355_v7, 0.0 }
  0x20   : > { %378 = vst [vmem:[%s622_s18 + $0x28] sm:$0xff] %v370_v9  ;;  %v364_v13 = vmax.f32 %v356_v11, 0.0 }
  0x21   : > { %v371_v14 = vadd.f32 %v363_v12, %v315_v5 }
  0x22   : > { %v372_v15 = vadd.f32 %v364_v13, %v316_v10 }
  0x23   : > { %379 = vst [vmem:[%s622_s18 + $0x30] sm:$0xff] %v371_v14 }
  0x24   : > { %380 = vst [vmem:[%s622_s18 + $0x38] sm:$0xff] %v372_v15 }
  0x25 PF: > { %s16_s21 = sadd.s32 1, %s518_s21  }
  0x26   : > { %p13_p4 = scmp.ge.s32.totalorder %s16_s21, 4  }
  0x28   :  { %15 = sbr.rel (!%p13_p4) target bundleno = 1 (0x1), region = 77 }

// kernel: _lambda_.6
= control target key start
LH: loop header
LB: loop body
LE: loop exit
PB: predicated region body
PF: predicated region fallthrough
CT: control target
= control target key end

     0   :  { %s2136_s12 = smov 0   ;;  %s2680_s0 = inlined_call_operand.vmem [shape: bf16[2,10,10,128], index: 0, kind: input, shape index: {}]   ;;  %s2681_s1 = inlined_call_operand.vmem [shape: bf16[9,128,128], index: 1, kind: input, shape index: {}]   ;;  %s2682_s2 = inlined_call_operand.vmem [shape: bf16[128,128], index: 2, kind: output, shape index: {0}]   ;;  %s2683_s3 = inlined_call_operand.vmem [shape: f32[2,2,128], index: 3, kind: output, shape index: {1}]  }
   0x1 LB: > { %s2142_s13 = sadd.s32 4294967295, %s2114_s12   ;;  %p1555_p0 = scmp.ge.s32.totalorder %s2114_s12, 1  ;;  %s2114_s12 = sphi %s2136_s12, %s14_s12  }
   0x2   : > { %p140_p1 = scmp.lt.s32.totalorder %s2114_s12, 3 }
   0x4   : > { %p141_p2 = pnand %p1555_p0, %p140_p1 }
   0x5   : > { %p168_p3 = scmp.lt.s32.totalorder (!%p141_p2), %s2142_s13, 1 }
   0x6   : > { %144 = sbr.rel (%p141_p2) target bundleno = 381 (0x17d), region = 28 }
   0xb   : > { %v2003_v0 = vld [vmem:[%s2681_s1 + $0xf8] sm:$0xff]  ;;  %v2002_v2 = vld [vmem:[%s2681_s1 + $0xf0] sm:$0xff]  ;;  %s2157_s20 = scalar_select %p168_p3, %s2142_s13, 1  ;;  %v2001_v6 = vld [vmem:[%s2681_s1 + $0xe8] sm:$0xff]  ;;  %vm530_vm0 = vsmask.f32 3328 }
   0xc   : > { %v2011_v1 = vld [vmem:[%s2681_s1 + $0x1b8] sm:$0xff]  ;;  %2083 = vmatpush.bf16.msra.mxu1 %v2003_v0  ;;  %308 = vmatpush.bf16.msra.mxu0 %v2003_v0  ;;  %v2010_v3 = vld [vmem:[%s2681_s1 + $0x1b0] sm:$0xff]  ;;  %v2009_v7 = vld [vmem:[%s2681_s1 + $0x1a8] sm:$0xff]  ;;  %vm531_vm1 = vsmask.f32 7440  ;;  %vm1017_vm3 = vcmask 1042432  }
   0xd   : > { %493 = vmatpush.bf16.msra.mxu2 %v2011_v1  ;;  %v2019_v4 = vld [vmem:[%s2681_s1 + $0x78] sm:$0xff]  ;;  %s2099_s25 = smul.u32 80, %s2157_s20  ;;  %v2018_v5 = vld [vmem:[%s2681_s1 + $0x70] sm:$0xff]  ;;  %v2017_v8 = vld [vmem:[%s2681_s1 + $0x68] sm:$0xff]  ;;  %vm1018_vm4 = vcmask 1046532   ;;  %s1559_s27 = sshll.u32 %s2157_s20, 1 }
   0xe   : > { %754 = vmatpush.bf16.msra.mxu3 %v2019_v4  ;;  %v2000_v10 = vld [vmem:[%s2681_s1 + $0xe0] sm:$0xff]  ;;  %v1999_v20 = vld [vmem:[%s2681_s1 + $0xd8] sm:$0xff]  ;;  %v1998_v31 = vld [vmem:[%s2681_s1 + $0xd0] sm:$0xff]  ;;  %vm1461_vm6 = vcmask 1040384   ;;  %s182_s30 = scalar_lea.vmem %s2683_s3, %s1559_s27 }
   0xf   : > { %s2178_s7 = scalar_lea.vmem %s2680_s0, %s2099_s25  ;;  %v2008_v13 = vld [vmem:[%s2681_s1 + $0x1a0] sm:$0xff]  ;;  %v2007_v23 = vld [vmem:[%s2681_s1 + $0x198] sm:$0xff]  ;;  %v2006_v32 = vld [vmem:[%s2681_s1 + $0x190] sm:$0xff] }
  0x10   : > { %2084 = vmatpush.bf16.msra.mxu1 %v2002_v2  ;;  %309 = vmatpush.bf16.msra.mxu0 %v2002_v2  ;;  %v2184_v9 = vld [vmem:[%s2178_s7 + $0x8] sm:$0xf]  ;;  %v2195_v14 = vld [vmem:[%s2178_s7] sm:$0xf]  ;;  %v2206_v21 = vld [vmem:[%s2178_s7 + $0x4] sm:$0x1] }
  0x11   : > { %494 = vmatpush.bf16.msra.mxu2 %v2010_v3  ;;  %v548_v11 = vshrl.u32 %v2184_v9, 16  ;;  %v551_v12 = vshll.u32 %v2184_v9, 16  ;;  %v2016_v15 = vld [vmem:[%s2681_s1 + $0x60] sm:$0xff]  ;;  %v534_v16 = vshrl.u32 %v2195_v14, 16  ;;  %v537_v17 = vshll.u32 %v2195_v14, 16  ;;  %v2015_v26 = vld [vmem:[%s2681_s1 + $0x58] sm:$0xff]  ;;  %vm2244_vm2 = vmor %vm530_vm0, %vm531_vm1 }
  0x12   : > { %755 = vmatpush.bf16.msra.mxu3 %v2018_v5  ;;  %v2209_v22 = vld [vmem:[%s2178_s7 + $0xc] sm:$0x1]  ;;  %v543_v28 = vshll.u32 %v2206_v21, 16  ;;  %v2226_v33 = vld [vmem:[%s2178_s7 + $0x28] sm:$0xf]  ;;  %v2014_v36 = vld [vmem:[%s2681_s1 + $0x50] sm:$0xff]  ;;  %v244_v47 = vunpack.c.l.b16 %v2184_v9 }
  0x13   : > { %v550_v18 = vrot.slane %v548_v11, 4  ;;  %v553_v19 = vrot.slane %v551_v12, 5  ;;  %v536_v24 = vrot.slane %v534_v16, 4  ;;  %v539_v25 = vrot.slane %v537_v17, 5  ;;  %v2229_v34 = vld [vmem:[%s2178_s7 + $0x30] sm:$0xf]  ;;  %vm2491_vm5 = vmor %vm1017_vm3, %vm1018_vm4 }
  0x14   : > { %2085 = vmatpush.bf16.msra.mxu1 %v2001_v6  ;;  %310 = vmatpush.bf16.msra.mxu0 %v2001_v6  ;;  %v557_v30 = vshll.u32 %v2209_v22, 16  ;;  %v2232_v35 = vld [vmem:[%s2178_s7 + $0x10] sm:$0xf]  ;;  %v545_v38 = vrot.slane %v543_v28, 5  ;;  %v1997_v41 = vld [vmem:[%s2681_s1 + $0xc8] sm:$0xff]  ;;  %v248_v45 = vunpack.c.l.b16 %v2226_v33  ;;  %v249_v46 = vunpack.c.l.b16 %v2229_v34  ;;  %v1996_v53 = vld [vmem:[%s2681_s1 + $0xc0] sm:$0xff] }
  0x15   : > { %495 = vmatpush.bf16.msra.mxu2 %v2009_v7  ;;  %v540_v27 = vor.u32 %v539_v25, %v536_v24  ;;  %v554_v29 = vor.u32 %v553_v19, %v550_v18  ;;  %v2241_v42 = vld [vmem:[%s2178_s7 + $0x18] sm:$0xf]  ;;  %v2005_v44 = vld [vmem:[%s2681_s1 + $0x188] sm:$0xff]  ;;  %v245_v48 = vunpack.c.l.b16 %v2232_v35  ;;  %v562_v54 = vshrl.u32 %v2232_v35, 16  ;;  %v2004_v59 = vld [vmem:[%s2681_s1 + $0x180] sm:$0xff] }
  0x16   : > { %756 = vmatpush.bf16.msra.mxu3 %v2017_v8  ;;  %v559_v40 = vrot.slane %v557_v30, 5  ;;  %v246_v49 = vunpack.c.l.b16 %v2241_v42  ;;  %v2013_v50 = vld [vmem:[%s2681_s1 + $0x48] sm:$0xff]  ;;  %v565_v55 = vshll.u32 %v2232_v35, 16  ;;  %v576_v56 = vshrl.u32 %v2241_v42, 16  ;;  %v1995_v58 = vld [vmem:[%s2681_s1 + $0x38] sm:$0xff]  ;;  %v2012_v7 = vld [vmem:[%s2681_s1 + $0x40] sm:$0xff] }
  0x17   : > { %v541_v37 = vrot.slane %v540_v27, 4  ;;  %v555_v39 = vrot.slane %v554_v29, 4  ;;  %v579_v57 = vshll.u32 %v2241_v42, 16  ;;  %v254_v60 = vpack.c.b16 %v249_v46, %v248_v45  ;;  %v2027_v62 = vld [vmem:[%s2681_s1 + $0x138] sm:$0xff]  ;;  %v2298_v8 = vld [vmem:[%s2178_s7 + $0x14] sm:$0x1] }
  0x18   : > { %2086 = vmatpush.bf16.msra.mxu1 %v2000_v10  ;;  %311 = vmatpush.bf16.msra.mxu0 %v2000_v10  ;;  %v252_v61 = vpack.c.b16 %v245_v48, %v244_v47  ;;  %v2043_v63 = vld [vmem:[%s2681_s1 + $0xb8] sm:$0xff]  ;;  %v564_v2 = vrot.slane %v562_v54, 4  ;;  %v567_v3 = vrot.slane %v565_v55, 5  ;;  %v578_v4 = vrot.slane %v576_v56, 4  ;;  %v1994_v11 = vld [vmem:[%s2681_s1 + $0x30] sm:$0xff]  ;;  %v2025_v24 = vld [vmem:[%s2681_s1 + $0x128] sm:$0xff] }
  0x19   : > { %496 = vmatpush.bf16.msra.mxu2 %v2008_v13  ;;  %v546_v51 = vsel %vm2244_vm2, %v541_v37, %v545_v38  ;;  %v560_v52 = vsel %vm2244_vm2, %v555_v39, %v559_v40  ;;  %v581_v5 = vrot.slane %v579_v57, 5  ;;  %v2292_v6 = vpack.c.b16 %v246_v49, %v245_v48  ;;  %v2301_v10 = vld [vmem:[%s2178_s7 + $0x1c] sm:$0x1]  ;;  %v2026_v13 = vld [vmem:[%s2681_s1 + $0x130] sm:$0xff]  ;;  %v2332_v27 = vld [vmem:[%s2178_s7 + $0x40] sm:$0xf] }
  0x1a   : > { %757 = vmatpush.bf16.msra.mxu3 %v2016_v15  ;;  %v690_v0 = vunpack.c.l.b16 %v546_v51  ;;  %v2288_v1 = vunpack.c.l.b16 %v560_v52  ;;  %v2051_v12 = vld [vmem:[%s2681_s1 + $0x178] sm:$0xff]  ;;  %v2042_v16 = vld [vmem:[%s2681_s1 + $0xb0] sm:$0xff]  ;;  %v568_v17 = vor.u32 %v567_v3, %v564_v2  ;;  %v571_v18 = vshll.u32 %v2298_v8, 16  ;;  %v2041_v28 = vld [vmem:[%s2681_s1 + $0xa8] sm:$0xff] }
  0x1b   : > { %v582_v19 = vor.u32 %v581_v5, %v578_v4  ;;  %v2050_v25 = vld [vmem:[%s2681_s1 + $0x170] sm:$0xff]  ;;  %v2338_v29 = vld [vmem:[%s2178_s7 + $0x20] sm:$0xf]  ;;  %v2049_v38 = vld [vmem:[%s2681_s1 + $0x168] sm:$0xff]  ;;  %v251_v40 = vunpack.c.l.b16 %v2332_v27  ;;  %v604_v54 = vshrl.u32 %v2226_v33, 16  ;;  %v607_v55 = vshll.u32 %v2226_v33, 16 }
  0x1c   : > { %2087 = vmatpush.bf16.msra.mxu1 %v1999_v20  ;;  %312 = vmatpush.bf16.msra.mxu0 %v1999_v20  ;;  %v698_v15 = vpack.c.b16 %v2288_v1, %v690_v0  ;;  %v585_v20 = vshll.u32 %v2301_v10, 16  ;;  %v569_v30 = vrot.slane %v568_v17, 4  ;;  %v1992_v37 = vld [vmem:[%s2681_s1 + $0x20] sm:$0xff]  ;;  %v590_v52 = vshrl.u32 %v2338_v29, 16  ;;  %v1991_v56 = vld [vmem:[%s2681_s1 + $0x18] sm:$0xff]  ;;  %v1990_v5 = vld [vmem:[%s2681_s1 + $0x10] sm:$0xff] }
  0x1d   : > { %497 = vmatpush.bf16.msra.mxu2 %v2007_v23  ;;  %v1993_v23 = vld [vmem:[%s2681_s1 + $0x28] sm:$0xff]  ;;  %v2040_v48 = vld [vmem:[%s2681_s1 + $0xa0] sm:$0xff]  ;;  %v606_v0 = vrot.slane %v604_v54, 4  ;;  %v609_v2 = vrot.slane %v607_v55, 5 }
  0x1e   : > { %758 = vmatpush.bf16.msra.mxu3 %v2015_v26  ;;  %v2329_v26 = vld [vmem:[%s2178_s7 + $0x38] sm:$0xf]  ;;  %v2384_v4 = vld [vmem:[%s2178_s7 + $0x24] sm:$0x1] }
  0x1f   : > { %v250_v39 = vunpack.c.l.b16 %v2329_v26  ;;  %v2048_v17 = vld [vmem:[%s2681_s1 + $0x160] sm:$0xff] }
  0x20   : > { %2088 = vmatpush.bf16.msra.mxu1 %v1998_v31  ;;  %313 = vmatpush.bf16.msra.mxu0 %v1998_v31  ;;  %v573_v31 = vrot.slane %v571_v18, 5  ;;  %v1989_v18 = vld [vmem:[%s2681_s1 + $0x8] sm:$0xff] }
  0x21   : > { %498 = vmatpush.bf16.msra.mxu2 %v2006_v32  ;;  %v583_v32 = vrot.slane %v582_v19, 4  ;;  %v255_v57 = vpack.c.b16 %v251_v40, %v250_v39  ;;  %v2038_v19 = vld [vmem:[%s2681_s1 + $0x90] sm:$0xff] }
  0x22   : > { %759 = vmatpush.bf16.msra.mxu3 %v2014_v36  ;;  %v587_v36 = vrot.slane %v585_v20, 5  ;;  %v2021_v20 = vld [vmem:[%s2681_s1 + $0x108] sm:$0xff] }
  0x24   : > { %2089 = vmatpush.bf16.msra.mxu1 %v1997_v41  ;;  %314 = vmatpush.bf16.msra.mxu0 %v1997_v41  ;;  %v2024_v41 = vld [vmem:[%s2681_s1 + $0x120] sm:$0xff]  ;;  %v588_v51 = vsel %vm2244_vm2, %v583_v32, %v587_v36  ;;  %v2035_v32 = vld [vmem:[%s2681_s1 + $0x1f8] sm:$0xff] }
  0x25   : > { %499 = vmatpush.bf16.msra.mxu2 %v2005_v44  ;;  %v247_v44 = vunpack.c.l.b16 %v2338_v29  ;;  %v2020_v36 = vld [vmem:[%s2681_s1 + $0x100] sm:$0xff] }
  0x26   : > { %760 = vmatpush.bf16.msra.mxu3 %v2013_v50  ;;  %v574_v50 = vsel %vm2244_vm2, %v569_v30, %v573_v31  ;;  %v1988_v31 = vld [vmem:[%s2681_s1] sm:$0xff] }
  0x27   : > { %v2381_v3 = vpack.c.b16 %v248_v45, %v247_v44  ;;  %v2039_v45 = vld [vmem:[%s2681_s1 + $0x98] sm:$0xff] }
  0x28   : > { %2090 = vmatpush.bf16.msra.mxu1 %v1996_v53  ;;  %315 = vmatpush.bf16.msra.mxu0 %v1996_v53  ;;  %v593_v53 = vshll.u32 %v2338_v29, 16 }
  0x29   : > { %500 = vmatpush.bf16.msra.mxu2 %v2004_v59  ;;  %v2023_v59 = vld [vmem:[%s2681_s1 + $0x118] sm:$0xff] }
  0x2a   : > { %761 = vmatpush.bf16.msra.mxu3 %v2012_v7  ;;  %v2022_v7 = vld [vmem:[%s2681_s1 + $0x110] sm:$0xff] }
  0x2b   : > { %326 = vmatmul.bf16.vlgmr.msra.gmra.mxu1 %v254_v60  ;;  %316 = vmatmul.bf16.vlgmr.msra.gmra.mxu0 %v252_v61  ;;  %v2375_v60 = vunpack.c.l.b16 %v574_v50  ;;  %v2377_v61 = vunpack.c.l.b16 %v588_v51  ;;  %v621_v50 = vshll.u32 %v2229_v34, 16  ;;  %v632_v51 = vshrl.u32 %v2329_v26, 16 }
  0x2c   : > { %395 = vmatpush.bf16.msrb.mxu1 %v1995_v58  ;;  %865 = vmatpush.bf16.msrb.mxu0 %v2027_v62  ;;  %v253_v58 = vpack.c.b16 %v247_v44, %v246_v49  ;;  %v592_v62 = vrot.slane %v590_v52, 4  ;;  %v2387_v49 = vld [vmem:[%s2178_s7 + $0x2c] sm:$0x1]  ;;  %v635_v52 = vshll.u32 %v2329_v26, 16 }
  0x2d   : > { %1141 = vmatpush.bf16.msrb.mxu2 %v2043_v63  ;;  %762 = vmatmul.bf16.vlgmr.msra.gmra.mxu3 %v698_v15  ;;  %v595_v63 = vrot.slane %v593_v53, 5  ;;  %v610_v15 = vor.u32 %v609_v2, %v606_v0  ;;  %v2034_v53 = vld [vmem:[%s2681_s1 + $0x1f0] sm:$0xff]  ;;  %v634_v2 = vrot.slane %v632_v51, 4 }
  0x2e   : > { %501 = vmatmul.bf16.vlgmr.msra.gmra.mxu2 %v2292_v6  ;;  %1252 = vmatpush.bf16.msrb.mxu3 %v2051_v12  ;;  %v2466_v0 = vld [vmem:[%s2178_s7 + $0x34] sm:$0x1] }
  0x2f   : > { %v596_v12 = vor.u32 %v595_v63, %v592_v62  ;;  %v2460_v62 = vpack.c.b16 %v250_v39, %v249_v46  ;;  %v2058_v63 = vld [vmem:[%s2681_s1 + $0x230] sm:$0xff]  ;;  %v2037_v46 = vld [vmem:[%s2681_s1 + $0x88] sm:$0xff] }
  0x30   : > { %396 = vmatpush.bf16.msrb.mxu1 %v1994_v11  ;;  %866 = vmatpush.bf16.msrb.mxu0 %v2026_v13  ;;  %v2397_v11 = vpack.c.b16 %v2377_v61, %v2375_v60  ;;  %v599_v13 = vshll.u32 %v2384_v4, 16 }
  0x31   : > { %1142 = vmatpush.bf16.msrb.mxu2 %v2042_v16  ;;  %v613_v16 = vshll.u32 %v2387_v49, 16 }
  0x32   : > { %1253 = vmatpush.bf16.msrb.mxu3 %v2050_v25  ;;  %v601_v25 = vrot.slane %v599_v13, 5 }
  0x33   : > { %v615_v30 = vrot.slane %v613_v16, 5  ;;  %v2046_v16 = vld [vmem:[%s2681_s1 + $0x150] sm:$0xff] }
  0x34   : > { %397 = vmatpush.bf16.msrb.mxu1 %v1993_v23  ;;  %867 = vmatpush.bf16.msrb.mxu0 %v2025_v24  ;;  %v2047_v23 = vld [vmem:[%s2681_s1 + $0x158] sm:$0xff]  ;;  %v597_v24 = vrot.slane %v596_v12, 4  ;;  %v2057_v12 = vld [vmem:[%s2681_s1 + $0x228] sm:$0xff] }
  0x35   : > { %1143 = vmatpush.bf16.msrb.mxu2 %v2041_v28  ;;  %v611_v28 = vrot.slane %v610_v15, 4 }
  0x36   : > { %1254 = vmatpush.bf16.msrb.mxu3 %v2049_v38  ;;  %v2434_v38 = vld [vmem:[%s2681_s1 + $0x238] sm:$0xff] }
  0x37   : > { %v616_v44 = vsel %vm2244_vm2, %v611_v28, %v615_v30 }
  0x38   : > { %398 = vmatpush.bf16.msrb.mxu1 %v1992_v37  ;;  %868 = vmatpush.bf16.msrb.mxu0 %v2024_v41  ;;  %v338_v37 = vunpack.c.l.b16 %v2195_v14  ;;  %v602_v41 = vsel %vm2244_vm2, %v597_v24, %v601_v25  ;;  %v2449_v55 = vunpack.c.l.b16 %v616_v44 }
  0x39   : > { %1144 = vmatpush.bf16.msrb.mxu2 %v2040_v48  ;;  %v618_v48 = vshrl.u32 %v2229_v34, 16  ;;  %v2447_v54 = vunpack.c.l.b16 %v602_v41  ;;  %v2031_v41 = vld [vmem:[%s2681_s1 + $0x1d8] sm:$0xff] }
  0x3a   : > { %1255 = vmatpush.bf16.msrb.mxu3 %v2048_v17 }
  0x3b   : > { %331 = vmatmul.bf16.gmra.mxu1 %v255_v57  ;;  %321 = vmatmul.bf16.gmra.mxu0 %v253_v58  ;;  %v623_v57 = vrot.slane %v621_v50, 5  ;;  %v339_v58 = vpack.c.b16 %v244_v47, %v338_v37  ;;  %v2469_v47 = vld [vmem:[%s2178_s7 + $0x3c] sm:$0x1]  ;;  %v2519_v37 = vld [vmem:[%s2178_s7 + $0x48] sm:$0xf] }
  0x3c   : > { %399 = vmatpush.bf16.msrb.mxu1 %v1991_v56  ;;  %869 = vmatpush.bf16.msrb.mxu0 %v2023_v59  ;;  %v620_v56 = vrot.slane %v618_v48, 4  ;;  %v809_v59 = vpack.c.b16 %v2375_v60, %v2288_v1  ;;  %v2033_v1 = vld [vmem:[%s2681_s1 + $0x1e8] sm:$0xff]  ;;  %v2476_v60 = vpack.c.b16 %v2449_v55, %v2447_v54  ;;  %v641_v15 = vshll.u32 %v2469_v47, 16 }
  0x3d   : > { %1145 = vmatpush.bf16.msrb.mxu2 %v2039_v45  ;;  %767 = vmatmul.bf16.gmra.mxu3 %v2397_v11  ;;  %v1832_v45 = vrot.slane %v2195_v14, 9  ;;  %v1022_v14 = vrot.slane %v2206_v21, 5  ;;  %v442_v48 = vunpack.c.l.b16 %v2519_v37 }
  0x3e   : > { %506 = vmatmul.bf16.gmra.mxu2 %v2381_v3  ;;  %1256 = vmatpush.bf16.msrb.mxu3 %v2047_v23  ;;  %v624_v39 = vor.u32 %v623_v57, %v620_v56  ;;  %v2032_v23 = vld [vmem:[%s2681_s1 + $0x1e0] sm:$0xff] }
  0x3f   : > { %v1023_v24 = vsel %vm2491_vm5, %v1832_v45, %v1022_v14  ;;  %v2052_v14 = vld [vmem:[%s2681_s1 + $0x200] sm:$0xff] }
  0x40   : > { %400 = vmatpush.bf16.msrb.mxu1 %v1990_v5  ;;  %870 = vmatpush.bf16.msrb.mxu0 %v2022_v7  ;;  %v637_v5 = vrot.slane %v635_v52, 5  ;;  %v627_v7 = vshll.u32 %v2466_v0, 16  ;;  %v625_v21 = vrot.slane %v624_v39, 4  ;;  %v1077_v25 = vunpack.c.l.b16 %v1023_v24  ;;  %v2030_v52 = vld [vmem:[%s2681_s1 + $0x1d0] sm:$0xff] }
  0x41   : > { %1146 = vmatpush.bf16.msrb.mxu2 %v2038_v19  ;;  %v2036_v19 = vld [vmem:[%s2681_s1 + $0x80] sm:$0xff]  ;;  %v1038_v24 = vrot.slane %v2384_v4, 5  ;;  %v1837_v4 = vrot.slane %v2226_v33, 9 }
  0x42   : > { %v638_v13 = vor.u32 %v637_v5, %v634_v2  ;;  %1257 = vmatpush.bf16.msrb.mxu3 %v2046_v16  ;;  %v629_v28 = vrot.slane %v627_v7, 5  ;;  %v649_v2 = vshll.u32 %v2332_v27, 16  ;;  %v1834_v5 = vrot.slane %v2232_v35, 9 }
  0x44   : > { %401 = vmatpush.bf16.msrb.mxu1 %v1989_v18  ;;  %871 = vmatpush.bf16.msrb.mxu0 %v2021_v20  ;;  %v1833_v18 = vrot.slane %v2184_v9, 9  ;;  %v1026_v20 = vrot.slane %v2209_v22, 5  ;;  %v2045_v9 = vld [vmem:[%s2681_s1 + $0x148] sm:$0xff]  ;;  %v639_v30 = vrot.slane %v638_v13, 4  ;;  %v630_v50 = vsel %vm2244_vm2, %v625_v21, %v629_v28 }
  0x45   : > { %1147 = vmatpush.bf16.msrb.mxu2 %v2037_v46  ;;  %v696_v56 = vunpack.c.l.b16 %v630_v50  ;;  %v2053_v46 = vld [vmem:[%s2681_s1 + $0x208] sm:$0xff]  ;;  %v651_v7 = vrot.slane %v649_v2, 5 }
  0x46   : > { %v2512_v22 = vsel %vm2491_vm5, %v1833_v18, %v1026_v20  ;;  %1258 = vmatpush.bf16.msrb.mxu3 %v2045_v9  ;;  %v1835_v20 = vrot.slane %v2241_v42, 9 }
  0x47   : > { %v811_v13 = vpack.c.b16 %v696_v56, %v2449_v55 }
  0x48   : > { %402 = vmatpush.bf16.msrb.mxu1 %v1988_v31  ;;  %872 = vmatpush.bf16.msrb.mxu0 %v2020_v36  ;;  %v643_v31 = vrot.slane %v641_v15, 5  ;;  %v2056_v36 = vld [vmem:[%s2681_s1 + $0x220] sm:$0xff] }
  0x49   : > { %1148 = vmatpush.bf16.msrb.mxu2 %v2036_v19 }
  0x4a   : > { %v644_v51 = vsel %vm2244_vm2, %v639_v30, %v643_v31  ;;  %v1042_v30 = vrot.slane %v2387_v49, 5  ;;  %v1838_v31 = vrot.slane %v2229_v34, 9  ;;  %v1839_v49 = vrot.slane %v2329_v26, 9 }
  0x4b   : > { %403 = vmatmul.bf16.vlgmr.msrb.gmra.mxu1 %v339_v58  ;;  %873 = vmatmul.bf16.vlgmr.msrb.gmra.mxu0 %v809_v59  ;;  %v697_v57 = vunpack.c.l.b16 %v644_v51  ;;  %v2029_v59 = vld [vmem:[%s2681_s1 + $0x1c8] sm:$0xff]  ;;  %v1050_v34 = vrot.slane %v2469_v47, 5  ;;  %v1841_v47 = vrot.slane %v2519_v37, 9 }
  0x4c   : > { %970 = vmatpush.bf16.msra.mxu1 %v2035_v32  ;;  %1357 = vmatpush.bf16.msra.mxu0 %v2434_v38  ;;  %v1078_v32 = vunpack.c.l.b16 %v2512_v22 }
  0x4d   : > { %772 = vmatmul.bf16.gmra.mxu3 %v2476_v60  ;;  %2091 = vmatpush.bf16.msra.mxu2 %v2434_v38  ;;  %v443_v38 = vpack.c.b16 %v442_v48, %v251_v40  ;;  %v2538_v58 = vpack.c.b16 %v697_v57, %v696_v56  ;;  %v2028_v40 = vld [vmem:[%s2681_s1 + $0x1c0] sm:$0xff]  ;;  %v1051_v51 = vsel %vm2491_vm5, %v1839_v49, %v1050_v34 }
  0x4e   : > { %511 = vmatmul.bf16.gmra.mxu2 %v2460_v62  ;;  %v1085_v44 = vpack.c.b16 %v1078_v32, %v1077_v25 }
  0x50   : > { %971 = vmatpush.bf16.msra.mxu1 %v2034_v53  ;;  %1358 = vmatpush.bf16.msra.mxu0 %v2058_v63  ;;  %v810_v53 = vpack.c.b16 %v2447_v54, %v2377_v61  ;;  %v2055_v61 = vld [vmem:[%s2681_s1 + $0x218] sm:$0xff]  ;;  %v2044_v54 = vld [vmem:[%s2681_s1 + $0x140] sm:$0xff] }
  0x51   : > { %2092 = vmatpush.bf16.msra.mxu2 %v2058_v63  ;;  %1259 = vmatpush.bf16.msrb.mxu3 %v2044_v54  ;;  %v646_v63 = vshrl.u32 %v2332_v27, 16 }
  0x53   : > { %v648_v39 = vrot.slane %v646_v63, 4 }
  0x54   : > { %972 = vmatpush.bf16.msra.mxu1 %v2033_v1  ;;  %1359 = vmatpush.bf16.msra.mxu0 %v2057_v12  ;;  %v1030_v1 = vrot.slane %v2298_v8, 5 }
  0x55   : > { %2093 = vmatpush.bf16.msra.mxu2 %v2057_v12  ;;  %v200_v12 = vld [vmem:[%s2178_s7 + $0x44] sm:$0x1]  ;;  %v652_v15 = vor.u32 %v651_v7, %v648_v39 }
  0x56   : > { %v1031_v45 = vsel %vm2491_vm5, %v1834_v5, %v1030_v1  ;;  %v655_v8 = vshll.u32 %v200_v12, 16  ;;  %v1054_v50 = vrot.slane %v200_v12, 5 }
  0x57   : > { %v1079_v35 = vunpack.c.l.b16 %v1031_v45  ;;  %v653_v18 = vrot.slane %v652_v15, 4 }
  0x58   : > { %973 = vmatpush.bf16.msra.mxu1 %v2032_v23  ;;  %1360 = vmatpush.bf16.msra.mxu0 %v2056_v36  ;;  %v657_v19 = vrot.slane %v655_v8, 5  ;;  %v1034_v23 = vrot.slane %v2301_v10, 5 }
  0x59   : > { %2094 = vmatpush.bf16.msra.mxu2 %v2056_v36  ;;  %v1196_v16 = vpack.c.b16 %v1079_v35, %v1078_v32  ;;  %v1046_v32 = vrot.slane %v2466_v0, 5  ;;  %v1043_v36 = vsel %vm2491_vm5, %v1837_v4, %v1042_v30  ;;  %v1840_v0 = vrot.slane %v2332_v27, 9 }
  0x5a   : > { %v658_v55 = vsel %vm2244_vm2, %v653_v18, %v657_v19  ;;  %v1035_v9 = vsel %vm2491_vm5, %v1835_v20, %v1034_v23  ;;  %v660_v27 = vshrl.u32 %v2519_v37, 16 }
  0x5b   : > { %408 = vmatmul.bf16.gmra.mxu1 %v2292_v6  ;;  %878 = vmatmul.bf16.gmra.mxu0 %v810_v53  ;;  %v2054_v6 = vld [vmem:[%s2681_s1 + $0x210] sm:$0xff]  ;;  %v2579_v21 = vunpack.c.l.b16 %v658_v55  ;;  %v1080_v22 = vunpack.c.l.b16 %v1035_v9  ;;  %v1055_v53 = vsel %vm2491_vm5, %v1840_v0, %v1054_v50 }
  0x5c   : > { %974 = vmatpush.bf16.msra.mxu1 %v2031_v41  ;;  %1361 = vmatpush.bf16.msra.mxu0 %v2055_v61  ;;  %v1082_v41 = vunpack.c.l.b16 %v1043_v36  ;;  %v1195_v56 = vunpack.c.l.b16 %v1055_v53 }
  0x5d   : > { %777 = vmatmul.bf16.gmra.mxu3 %v2538_v58  ;;  %2095 = vmatpush.bf16.msra.mxu2 %v2055_v61  ;;  %v812_v10 = vpack.c.b16 %v2579_v21, %v697_v57  ;;  %v1086_v28 = vpack.c.b16 %v1080_v22, %v1079_v35  ;;  %v202_v57 = vld [vmem:[%s2178_s7 + $0x4c] sm:$0x1]  ;;  %s1557_s7 = sshll.u32 %s2142_s13, 3 }
  0x5e   : > { %516 = vmatmul.bf16.gmra.mxu2 %v443_v38  ;;  %v1058_v38 = vrot.slane %v202_v57, 5  ;;  %v669_v1 = vshll.u32 %v202_v57, 16  ;;  %p174_p4 = scmp.lt.s32.totalorder %s1557_s7, 15 }
  0x60   : > { %975 = vmatpush.bf16.msra.mxu1 %v2030_v52  ;;  %1362 = vmatpush.bf16.msra.mxu0 %v2054_v6  ;;  %v1084_v52 = vunpack.c.l.b16 %v1051_v51  ;;  %v1059_v61 = vsel %vm2491_vm5, %v1841_v47, %v1058_v38  ;;  %v671_v39 = vrot.slane %v669_v1, 5  ;;  %s2689_s7 = smov (!%p174_p4, %s1557_s7), 15 }
  0x61   : > { %2096 = vmatpush.bf16.msra.mxu2 %v2054_v6  ;;  %v1306_v54 = vunpack.c.l.b16 %v1059_v61  ;;  %v662_v6 = vrot.slane %v660_v27, 4  ;;  %s1558_s24 = sshll.u32 %s2689_s7, 2 }
  0x62   : > { %v1199_v26 = vpack.c.b16 %v1195_v56, %v1084_v52  ;;  %s2643_s26 = scalar_lea.vmem %s2682_s2, %s1558_s24 }
  0x64   : > { %976 = vmatpush.bf16.msra.mxu1 %v2029_v59  ;;  %1363 = vmatpush.bf16.msra.mxu0 %v2053_v46  ;;  %v663_v59 = vshll.u32 %v2519_v37, 16 }
  0x65   : > { %2097 = vmatpush.bf16.msra.mxu2 %v2053_v46 }
  0x68   : > { %977 = vmatpush.bf16.msra.mxu1 %v2028_v40  ;;  %1364 = vmatpush.bf16.msra.mxu0 %v2052_v14  ;;  %v665_v40 = vrot.slane %v663_v59, 5 }
  0x69   : > { %2098 = vmatpush.bf16.msra.mxu2 %v2052_v14 }
  0x6a   : > { %v666_v5 = vor.u32 %v665_v40, %v662_v6 }
  0x6b   : > { %413 = vmatmul.bf16.gmra.mxu1 %v2381_v3  ;;  %883 = vmatmul.bf16.gmra.mxu0 %v811_v13  ;;  %v1836_v3 = vrot.slane %v2338_v29, 9 }
  0x6c   : > { %v667_v46 = vrot.slane %v666_v5, 4 }
  0x6d   : > { %1260 = vmatmul.bf16.vlgmr.msrb.gmra.mxu3 %v1196_v16  ;;  %v1039_v42 = vsel %vm2491_vm5, %v1836_v3, %v1038_v24 }
  0x6e   : > { %1149 = vmatmul.bf16.vlgmr.msrb.gmra.mxu2 %v1085_v44  ;;  %v1081_v25 = vunpack.c.l.b16 %v1039_v42  ;;  %v1047_v44 = vsel %vm2491_vm5, %v1838_v31, %v1046_v32  ;;  %v672_v17 = vsel %vm2244_vm2, %v667_v46, %v671_v39 }
  0x6f   : > { %v919_v13 = vunpack.c.l.b16 %v672_v17 }
  0x70   : > { %v1197_v29 = vpack.c.b16 %v1081_v25, %v1080_v22  ;;  %v1087_v48 = vpack.c.b16 %v1082_v41, %v1081_v25 }
  0x71   : > { %v920_v35 = vpack.c.b16 %v919_v13, %v2579_v21 }
  0x7b   : > { %418 = vmatmul.bf16.gmra.mxu1 %v2460_v62  ;;  %888 = vmatmul.bf16.gmra.mxu0 %v812_v10  ;;  %v1083_v62 = vunpack.c.l.b16 %v1047_v44 }
  0x7d   : > { %1265 = vmatmul.bf16.gmra.mxu3 %v1197_v29  ;;  %v1198_v33 = vpack.c.b16 %v1083_v62, %v1082_v41 }
  0x7e   : > { %1154 = vmatmul.bf16.gmra.mxu2 %v1086_v28 }
  0x8b   : > { %978 = vmatmul.bf16.vlgmr.msra.gmra.mxu1 %v2397_v11  ;;  %1365 = vmatmul.bf16.vlgmr.msra.gmra.mxu0 %v1086_v28  ;;  %v1088_v11 = vpack.c.b16 %v1084_v52, %v1083_v62 }
  0x8d   : > { %1270 = vmatmul.bf16.gmra.mxu3 %v1198_v33 }
  0x8e   : > { %1159 = vmatmul.bf16.gmra.mxu2 %v1087_v48 }
  0x9b   : > { %983 = vmatmul.bf16.gmra.mxu1 %v2476_v60  ;;  %1370 = vmatmul.bf16.gmra.mxu0 %v1087_v48  ;;  %v1307_v60 = vpack.c.b16 %v1306_v54, %v1195_v56 }
  0x9d   : > { %1275 = vmatmul.bf16.gmra.mxu3 %v1199_v26 }
  0x9e   : > { %1164 = vmatmul.bf16.gmra.mxu2 %v1088_v11 }
  0xa8   : > { %v327_v63 = vpop.f32.mrf.mxu1  ;;  %v317_v2 = vpop.f32.mrf.mxu0 }
  0xab   : > { %988 = vmatmul.bf16.gmra.mxu1 %v2538_v58  ;;  %1375 = vmatmul.bf16.gmra.mxu0 %v1088_v11 }
  0xae   : > { %1380 = vmatmul.bf16.vlgmr.msra.gmra.mxu2 %v1307_v60 }
  0xb0   : > { %v329_v45 = vpop.f32.mrf.mxu1  ;;  %v319_v37 = vpop.f32.mrf.mxu0 }
  0xb1   : > { %v502_v7 = vpop.f32.mrf.mxu2  ;;  %v763_v12 = vpop.f32.mrf.mxu3 }
  0xb8   : > { %v332_v8 = vpop.f32.mrf.mxu1  ;;  %v322_v16 = vpop.f32.mrf.mxu0 }
  0xb9   : > { %v504_v15 = vpop.f32.mrf.mxu2  ;;  %v2612_v14 = vpop.f32.mrf.mxu3 }
  0xbb   : > { %993 = vmatmul.bf16.gmra.mxu1 %v920_v35 }
  0xc0   : > { %v334_v18 = vpop.f32.mrf.mxu1  ;;  %v324_v19 = vpop.f32.mrf.mxu0 }
  0xc1   : > { %v507_v58 = vpop.f32.mrf.mxu2  ;;  %v768_v20 = vpop.f32.mrf.mxu3 }
  0xc8   : > { %v404_v55 = vpop.f32.mrf.mxu1  ;;  %v874_v3 = vpop.f32.mrf.mxu0 }
  0xc9   : > { %v509_v23 = vpop.f32.mrf.mxu2  ;;  %v405_v24 = vadd.f32 %v404_v55, %v317_v2  ;;  %v2614_v9 = vpop.f32.mrf.mxu3 }
  0xcb   : > { %v522_v43 = vadd.f32 %v502_v7, %v405_v24 }
  0xcd   : > { %v783_v22 = vadd.f32 %v763_v12, %v522_v43 }
  0xcf   : > { %v894_v42 = vadd.f32 %v874_v3, %v783_v22 }
  0xd0   : > { %v406_v10 = vpop.f32.mrf.mxu1  ;;  %v876_v25 = vpop.f32.mrf.mxu0 }
  0xd1   : > { %v512_v21 = vpop.f32.mrf.mxu2  ;;  %v407_v28 = vadd.f32 %v406_v10, %v319_v37  ;;  %v773_v4 = vpop.f32.mrf.mxu3 }
  0xd3   : > { %v523_v29 = vadd.f32 %v504_v15, %v407_v28 }
  0xd8   : > { %v409_v31 = vpop.f32.mrf.mxu1  ;;  %v879_v32 = vpop.f32.mrf.mxu0 }
  0xd9   : > { %v514_v30 = vpop.f32.mrf.mxu2  ;;  %v410_v36 = vadd.f32 %v409_v31, %v322_v16  ;;  %v2616_v33 = vpop.f32.mrf.mxu3  ;;  %v784_v16 = vadd.f32 %v2612_v14, %v523_v29 }
  0xdb   : > { %v524_v41 = vadd.f32 %v507_v58, %v410_v36 }
  0xdd   : > { %v785_v44 = vadd.f32 %v768_v20, %v524_v41 }
  0xdf   : > { %v896_v62 = vadd.f32 %v879_v32, %v785_v44 }
  0xe0   : > { %v411_v49 = vpop.f32.mrf.mxu1  ;;  %v2618_v34 = vpop.f32.mrf.mxu0 }
  0xe1   : > { %v517_v48 = vpop.f32.mrf.mxu2  ;;  %v412_v0 = vadd.f32 %v411_v49, %v324_v19  ;;  %v2620_v11 = vpop.f32.mrf.mxu3 }
  0xe3   : > { %v525_v50 = vadd.f32 %v509_v23, %v412_v0 }
  0xe8   : > { %v414_v52 = vpop.f32.mrf.mxu1  ;;  %v884_v53 = vpop.f32.mrf.mxu0 }
  0xe9   : > { %v519_v51 = vpop.f32.mrf.mxu2  ;;  %v415_v56 = vadd.f32 %v414_v52, %v327_v63  ;;  %v2628_v6 = vpop.f32.mrf.mxu3 }
  0xeb   : > { %v526_v57 = vadd.f32 %v512_v21, %v415_v56 }
  0xed   : > { %v787_v26 = vadd.f32 %v773_v4, %v526_v57  ;;  %v786_v4 = vadd.f32 %v2614_v9, %v525_v50 }
  0xef   : > { %v2622_v47 = vadd.f32 %v884_v53, %v787_v26  ;;  %v897_v49 = vadd.f32 %v2618_v34, %v786_v4 }
  0xf0   : > { %v416_v27 = vpop.f32.mrf.mxu1  ;;  %v2624_v59 = vpop.f32.mrf.mxu0 }
  0xf1   : > { %v1150_v38 = vpop.f32.mrf.mxu2  ;;  %v417_v61 = vadd.f32 %v416_v27, %v329_v45  ;;  %v1261_v1 = vpop.f32.mrf.mxu3 }
  0xf3   : > { %v2626_v54 = vadd.f32 %v514_v30, %v417_v61 }
  0xf8   : > { %v419_v2 = vpop.f32.mrf.mxu1  ;;  %v2630_v60 = vpop.f32.mrf.mxu0 }
  0xf9   : > { %v1152_v40 = vpop.f32.mrf.mxu2  ;;  %v420_v63 = vadd.f32 %v419_v2, %v332_v8  ;;  %v1263_v45 = vpop.f32.mrf.mxu3  ;;  %v895_v8 = vadd.f32 %v876_v25, %v784_v16 }
  0xfb   : > { %v2632_v5 = vadd.f32 %v517_v48, %v420_v63 }
 0x100   : > { %v421_v39 = vpop.f32.mrf.mxu1  ;;  %v2634_v7 = vpop.f32.mrf.mxu0 }
 0x101   : > { %v1155_v46 = vpop.f32.mrf.mxu2  ;;  %v422_v37 = vadd.f32 %v421_v39, %v334_v18  ;;  %v1266_v3 = vpop.f32.mrf.mxu3 }
 0x103   : > { %v2636_v17 = vadd.f32 %v519_v51, %v422_v37 }
 0x108   : > { %v979_v12 = vpop.f32.mrf.mxu1  ;;  %v1366_v13 = vpop.f32.mrf.mxu0 }
 0x109   : > { %v999_v35 = vadd.f32 %v979_v12, %v894_v42  ;;  %v1157_v15 = vpop.f32.mrf.mxu2  ;;  %v1268_v36 = vpop.f32.mrf.mxu3 }
 0x10b   : > { %v1170_v58 = vadd.f32 %v1150_v38, %v999_v35 }
 0x10d   : > { %v1281_v19 = vadd.f32 %v1261_v1, %v1170_v58  ;;  %v788_v1 = vadd.f32 %v2616_v33, %v2626_v54 }
 0x10f   : > { %v1386_v18 = vadd.f32 %v1366_v13, %v1281_v19  ;;  %v899_v12 = vadd.f32 %v2624_v59, %v788_v1 }
 0x110   : > { %v981_v20 = vpop.f32.mrf.mxu1  ;;  %v1368_v23 = vpop.f32.mrf.mxu0 }
 0x111   : > { %v1000_v55 = vadd.f32 %v981_v20, %v895_v8  ;;  %v1160_v43 = vpop.f32.mrf.mxu2  ;;  %v1394_v21 = vpack.c.bf16 %v1386_v18, %v1386_v18  ;;  %v1271_v26 = vpop.f32.mrf.mxu3 }
 0x113   : > { %v1171_v24 = vadd.f32 %v1152_v40, %v1000_v55  ;;  %v2646_v30 = vunpack.c.l.bf16 %v1394_v21  ;;  %v790_v21 = vadd.f32 %v2628_v6, %v2636_v17 }
 0x115   : > { %v1282_v22 = vadd.f32 %v1263_v45, %v1171_v24 }
 0x117   : > { %v1387_v42 = vadd.f32 %v1368_v23, %v1282_v22 }
 0x118   : > { %v984_v14 = vpop.f32.mrf.mxu1  ;;  %v1371_v10 = vpop.f32.mrf.mxu0 }
 0x119   : > { %v1395_v25 = vpack.c.bf16 %v1387_v42, %v1387_v42  ;;  %v2063_v28 = vpack.c.bf16 %v1387_v42, %v1386_v18  ;;  %v1001_v29 = vadd.f32 %v984_v14, %v896_v62  ;;  %v1162_v48 = vpop.f32.mrf.mxu2  ;;  %v1273_v35 = vpop.f32.mrf.mxu3 }
 0x11b   : > { %2064 = vst [vmem:[%s2643_s26] sm:$0xff] %v2063_v28   ;;  %v2649_v31 = vunpack.c.l.bf16 %v1395_v25  ;;  %v1172_v32 = vadd.f32 %v1155_v46, %v1001_v29  ;;  %v901_v25 = vadd.f32 %v2634_v7, %v790_v21 }
 0x11d   : > { %v1418_v41 = vadd.f32 %v2649_v31, %v2646_v30  ;;  %v1283_v44 = vadd.f32 %v1266_v3, %v1172_v32 }
 0x11f   : > { %v1388_v0 = vadd.f32 %v1371_v10, %v1283_v44 }
 0x120   : > { %v986_v51 = vpop.f32.mrf.mxu1  ;;  %v1373_v52 = vpop.f32.mrf.mxu0 }
 0x121   : > { %v1396_v62 = vpack.c.bf16 %v1388_v0, %v1388_v0  ;;  %v1002_v9 = vadd.f32 %v986_v51, %v897_v49  ;;  %v1165_v27 = vpop.f32.mrf.mxu2  ;;  %v1276_v22 = vpop.f32.mrf.mxu3 }
 0x123   : > { %v2654_v50 = vunpack.c.l.bf16 %v1396_v62  ;;  %v1173_v53 = vadd.f32 %v1157_v15, %v1002_v9 }
 0x125   : > { %v1419_v56 = vadd.f32 %v1418_v41, %v2654_v50  ;;  %v1284_v57 = vadd.f32 %v1268_v36, %v1173_v53 }
 0x127   : > { %v1389_v38 = vadd.f32 %v1373_v52, %v1284_v57 }
 0x128   : > { %v989_v61 = vpop.f32.mrf.mxu1  ;;  %v1376_v63 = vpop.f32.mrf.mxu0 }
 0x129   : > { %v1397_v40 = vpack.c.bf16 %v1389_v38, %v1389_v38  ;;  %v2068_v2 = vpack.c.bf16 %v1389_v38, %v1388_v0  ;;  %v1003_v34 = vadd.f32 %v989_v61, %v2622_v47  ;;  %v1167_v8 = vpop.f32.mrf.mxu2  ;;  %v789_v47 = vadd.f32 %v2620_v11, %v2632_v5  ;;  %v1278_v41 = vpop.f32.mrf.mxu3 }
 0x12b   : > { %2080 = vst [vmem:[%s2643_s26 + $0x8] sm:$0xff] %v2068_v2   ;;  %v1413_v46 = vunpack.c.l.bf16 %v1397_v40  ;;  %v1174_v39 = vadd.f32 %v1160_v43, %v1003_v34  ;;  %v900_v55 = vadd.f32 %v2630_v60, %v789_v47 }
 0x12d   : > { %v1420_v37 = vadd.f32 %v1419_v56, %v1413_v46  ;;  %v1285_v45 = vadd.f32 %v1271_v26, %v1174_v39 }
 0x12f   : > { %v1390_v13 = vadd.f32 %v1376_v63, %v1285_v45 }
 0x130   : > { %v991_v15 = vpop.f32.mrf.mxu1  ;;  %v1378_v33 = vpop.f32.mrf.mxu0 }
 0x131   : > { %v1398_v16 = vpack.c.bf16 %v1390_v13, %v1390_v13  ;;  %v1004_v58 = vadd.f32 %v991_v15, %v899_v12  ;;  %v1381_v11 = vpop.f32.mrf.mxu2 }
 0x133   : > { %v1414_v19 = vunpack.c.l.bf16 %v1398_v16  ;;  %v1175_v20 = vadd.f32 %v1162_v48, %v1004_v58 }
 0x135   : > { %v1421_v54 = vadd.f32 %v1420_v37, %v1414_v19  ;;  %v1286_v23 = vadd.f32 %v1273_v35, %v1175_v20 }
 0x137   : > { %v1391_v3 = vadd.f32 %v1378_v33, %v1286_v23 }
 0x138   : > { %v994_v18 = vpop.f32.mrf.mxu1 }
 0x139   : > { %v1399_v59 = vpack.c.bf16 %v1391_v3, %v1391_v3  ;;  %v2073_v24 = vpack.c.bf16 %v1391_v3, %v1390_v13  ;;  %v1005_v43 = vadd.f32 %v994_v18, %v900_v55  ;;  %v1383_v49 = vpop.f32.mrf.mxu2 }
 0x13b   : > { %2081 = vst [vmem:[%s2643_s26 + $0x10] sm:$0xff] %v2073_v24   ;;  %v1415_v42 = vunpack.c.l.bf16 %v1399_v59  ;;  %v1176_v14 = vadd.f32 %v1165_v27, %v1005_v43 }
 0x13d   : > { %v1422_v5 = vadd.f32 %v1421_v54, %v1415_v42  ;;  %v1287_v10 = vadd.f32 %v1276_v22, %v1176_v14 }
 0x13f   : > { %v1392_v28 = vadd.f32 %v1381_v11, %v1287_v10 }
 0x140   : > { %v996_v60 = vpop.f32.mrf.mxu1 }
 0x141   : > { %v1400_v29 = vpack.c.bf16 %v1392_v28, %v1392_v28  ;;  %v1006_v4 = vadd.f32 %v996_v60, %v901_v25 }
 0x143   : > { %v1416_v32 = vunpack.c.l.bf16 %v1400_v29  ;;  %v1177_v36 = vadd.f32 %v1167_v8, %v1006_v4 }
 0x145   : > { %v1423_v44 = vadd.f32 %v1422_v5, %v1416_v32  ;;  %v1288_v48 = vadd.f32 %v1278_v41, %v1177_v36 }
 0x147   : > { %v1393_v6 = vadd.f32 %v1383_v49, %v1288_v48 }
 0x149   : > { %v1401_v17 = vpack.c.bf16 %v1393_v6, %v1393_v6  ;;  %v2078_v0 = vpack.c.bf16 %v1393_v6, %v1392_v28 }
 0x14b   : > { %2082 = vst [vmem:[%s2643_s26 + $0x18] sm:$0xff] %v2078_v0   ;;  %v1417_v51 = vunpack.c.l.bf16 %v1401_v17 }
 0x14d   : > { %v1424_v52 = vadd.f32 %v1423_v44, %v1417_v51 }
 0x14f   : > { %v1425_v62 = vrot.slane %v1424_v52, 4 }
 0x151   : > { %v1426_v9 = vadd.f32 %v1425_v62, %v1424_v52 }
 0x153   : > { %v1427_v53 = vrot.slane %v1426_v9, 2 }
 0x155   : > { %v1428_v7 = vadd.f32 %v1427_v53, %v1426_v9 }
 0x157   : > { %v1429_v56 = vrot.slane %v1428_v7, 1 }
 0x159   : > { %v1430_v57 = vadd.f32 %v1429_v56, %v1428_v7 }
 0x15b   : > { %v1431_v26 = vmul.f32 0.015625, %v1430_v57 }
 0x15d   : > { %v1432_v38 = vsub.f32 %v2646_v30, %v1431_v26  ;;  %v1433_v27 = vsub.f32 %v2649_v31, %v1431_v26  ;;  %v1434_v61 = vsub.f32 %v2654_v50, %v1431_v26  ;;  %v1435_v40 = vsub.f32 %v1413_v46, %v1431_v26 }
 0x15e   : > { %v1436_v2 = vsub.f32 %v1414_v19, %v1431_v26  ;;  %v1437_v34 = vsub.f32 %v1415_v42, %v1431_v26  ;;  %v1438_v63 = vsub.f32 %v1416_v32, %v1431_v26  ;;  %v1439_v1 = vsub.f32 %v1417_v51, %v1431_v26 }
 0x15f   : > { %v1440_v39 = vmul.f32 %v1432_v38, %v1432_v38  ;;  %v1441_v37 = vmul.f32 %v1433_v27, %v1433_v27  ;;  %v1442_v45 = vmul.f32 %v1434_v61, %v1434_v61  ;;  %v1443_v13 = vmul.f32 %v1435_v40, %v1435_v40 }
 0x160   : > { %v1444_v15 = vmul.f32 %v1436_v2, %v1436_v2  ;;  %v1445_v58 = vmul.f32 %v1437_v34, %v1437_v34  ;;  %v1446_v8 = vmul.f32 %v1438_v63, %v1438_v63  ;;  %v1447_v47 = vmul.f32 %v1439_v1, %v1439_v1 }
 0x161   : > { %v1448_v12 = vadd.f32 %v1441_v37, %v1440_v39 }
 0x163   : > { %v1449_v35 = vadd.f32 %v1448_v12, %v1442_v45 }
 0x165   : > { %v1450_v16 = vadd.f32 %v1449_v35, %v1443_v13 }
 0x167   : > { %v1451_v30 = vadd.f32 %v1450_v16, %v1444_v15 }
 0x169   : > { %v1452_v31 = vadd.f32 %v1451_v30, %v1445_v58 }
 0x16b   : > { %v1453_v50 = vadd.f32 %v1452_v31, %v1446_v8 }
 0x16d   : > { %v1454_v46 = vadd.f32 %v1453_v50, %v1447_v47 }
 0x16f   : > { %v1455_v19 = vrot.slane %v1454_v46, 4 }
 0x171   : > { %v1456_v20 = vadd.f32 %v1455_v19, %v1454_v46 }
 0x173   : > { %v1457_v33 = vrot.slane %v1456_v20, 2 }
 0x175   : > { %v1458_v54 = vadd.f32 %v1457_v33, %v1456_v20 }
 0x177   : > { %v1459_v23 = vrot.slane %v1458_v54, 1 }
 0x179   : > { %v1460_v55 = vadd.f32 %v1459_v23, %v1458_v54 }
 0x17b   : > { %v1462_v3 = vsel %vm1461_vm6, %v1430_v57, %v1460_v55 }
 0x17c   : > { %1463 = vst [vmem:[%s182_s30] sm:$0x3] %v1462_v3 }
 0x17d PF: > { %s14_s12 = sadd.s32 1, %s2114_s12  }
 0x17e   : > { %p11_p5 = scmp.ge.s32.totalorder %s14_s12, 4  }
 0x180   :  { %13 = sbr.rel (!%p11_p5) target bundleno = 1 (0x1), region = 78 }

</bundles_post_ra>
